<compile_context>
chip_gen: v7x
topology: tpu7x:2x2x1
jax: 0.10.0
libtpu: 0.0.40
codegen_flags: <defaults>
</compile_context>

<pallas_src>
import math

import jax
import jax.numpy as jnp
from jax import lax
from jax.experimental import pallas as pl
from jax.experimental.pallas import tpu as pltpu


def gru_kernel(x_ref, wih_t_ref, whh_t_ref, bias_ref, bhh_n_ref, out_ref, h_scratch):
    """One (batch-chunk, time-chunk) grid step of the GRU recurrence.

    x_ref:     (BB, TT, D)    bf16 batch-first input chunk
    wih_t_ref: (D, 3*GP)      bf16 input->hidden weights, gate-padded, transposed
    whh_t_ref: (GP, 3*GP)     bf16 hidden->hidden weights, gate-padded, transposed
    bias_ref:  (1, 3*GP)      f32  hoisted bias: bih + [bhh_r, bhh_z, 0]
    bhh_n_ref: (1, GP)        f32  bhh for the n-gate (must stay inside the loop)
    out_ref:   (BB, TT*H)     f32  flattened lane-dense output chunk
    h_scratch: (BB, GP)       f32  running hidden state; persists across T axis
    """
    BB, TT, D = x_ref.shape
    GP = h_scratch.shape[-1]
    H = out_ref.shape[-1] // TT

    # h0 = 0 at the start of each batch-chunk's time sweep.
    @pl.when(pl.program_id(1) == 0)
    def _():
        h_scratch[...] = jnp.zeros_like(h_scratch)

    # ---- Hoisted, time-independent input projection: one MXU matmul per chunk
    # (bf16 operands, f32 accumulation), with the foldable biases added once.
    x_bf = x_ref[...].reshape(BB * TT, D)
    gi_all = (
        jnp.dot(x_bf, wih_t_ref[...], preferred_element_type=jnp.float32)
        + bias_ref[...]
    ).reshape(BB, TT, 3 * GP)

    whh_t = whh_t_ref[...]                                   # (GP, 3*GP) bf16
    # Hoist the broadcast out of the loop (JAX does not CSE broadcast_in_dim).
    bhh_n = jnp.broadcast_to(bhh_n_ref[...], (BB, GP))       # (BB, GP) f32

    # ---- Sequential recurrence.  TT is small & static (<= 32), so a Python
    # loop gives a fully unrolled body with static-only slicing and full
    # scheduler visibility.  The hidden state `h` stays in vregs; only
    # h @ Whh^T + gate math is on the serial critical path.
    h = h_scratch[...]                                       # (BB, GP) f32
    for i in range(TT):
        gi = gi_all[:, i, :]                                 # (BB, 3*GP) f32
        gh = jnp.dot(h.astype(jnp.bfloat16), whh_t,
                     preferred_element_type=jnp.float32)     # (BB, 3*GP) f32
        # Each gate slice starts at a lane offset that is a multiple of GP
        # (a multiple of 128) -> pure full-block slices, no lane rotates.
        r = jax.nn.sigmoid(gi[:, :GP] + gh[:, :GP])
        z = jax.nn.sigmoid(gi[:, GP:2 * GP] + gh[:, GP:2 * GP])
        n = jnp.tanh(gi[:, 2 * GP:] + r * (gh[:, 2 * GP:] + bhh_n))
        # PyTorch GRUCell: hy = n + z * (h - n)  (== (1 - z) * n + z * h)
        h = n + z * (h - n)
        # Off the critical path: store the valid H lanes of this step.
        out_ref[:, i * H:(i + 1) * H] = h[:, :H].astype(out_ref.dtype)

    # Single writeback of the carried state for the next time-chunk.
    h_scratch[...] = h
    # The (BB, TT*H) out block (lane-dense, >= 256 lanes for H=32) is written as
    # one wide block -> unmasked stores and a single block DMA per grid step.


def _choose_time_block(T, H, cap=32):
    """Pick (TT, Tp): time block and padded sequence length.

    Constraints: TT*H must be lane-dense-friendly (multiple of 128) unless TT
    covers the whole padded sequence; TT is a multiple of 16 in the multi-block
    case (bf16 sublane packing of the (BB, TT, D) input block); unroll capped.
    """
    tp8 = -(-T // 8) * 8
    if tp8 <= cap:
        # Whole (8-padded) sequence in one time block (block == full dim, so the
        # (8,128) / lane-density constraints are trivially satisfied).
        return tp8, tp8
    unit = 16
    while (unit * H) % 128 != 0:
        unit += 16
    best = None
    tt = unit
    while tt <= max(cap, unit):
        tp = -(-T // tt) * tt
        if best is None or (tp, -tt) < (best[1], -best[0]):
            best = (tt, tp)
        tt += unit
    return best


def _vmem_estimate(BB, TT, D, H, GP):
    """Rough per-core VMEM footprint (bytes) of one pipelined grid step."""
    bf16, f32 = 2, 4
    x_blk = BB * TT * D * bf16
    out_blk = BB * TT * H * f32
    wih = D * 3 * GP * bf16
    whh = GP * 3 * GP * bf16
    biases = (3 * GP + GP) * f32
    gi_all = BB * TT * 3 * GP * f32
    scratch = BB * GP * f32
    # inputs/outputs/weights double-buffered by the BlockSpec pipeline.
    return 2 * (x_blk + out_blk + wih + whh + biases) + gi_all + scratch


class ProjRNNPallas:
    """JAX/Pallas port of ProjRNN (synthetic deterministic parameters)."""

    def __init__(self, base_proj_channels, rnn_input, rnn_units, key):
        self.base_proj_channels = base_proj_channels
        self.rnn_input = rnn_input
        self.rnn_units = rnn_units
        self.weights_dim = rnn_units * 3

        def linear_params(k, in_f, out_f):
            # nn.Linear default init: U(-1/sqrt(in), 1/sqrt(in)) for weight and bias.
            kw, kb = jax.random.split(k)
            bound = 1.0 / math.sqrt(in_f)
            w = jax.random.uniform(kw, (out_f, in_f), jnp.float32, -bound, bound)
            b = jax.random.uniform(kb, (out_f,), jnp.float32, -bound, bound)
            return w, b

        k1, k2, k3, k4 = jax.random.split(key, 4)
        self.w_ih = linear_params(k1, base_proj_channels, self.weights_dim * rnn_input)
        self.w_hh = linear_params(k2, base_proj_channels, self.weights_dim * rnn_units)
        self.b_ih = linear_params(k3, base_proj_channels, self.weights_dim)
        self.b_hh = linear_params(k4, base_proj_channels, self.weights_dim)

    def _make_gru_params(self, base_proj):
        """PyTorch-layout GRU cell params (also used by the reference)."""
        def lin(params, x):
            w, b = params
            return x @ w.T + b

        D, H, WD = self.rnn_input, self.rnn_units, self.weights_dim
        weight_ih = lin(self.w_ih, base_proj).reshape(WD, D) * math.sqrt(1.0 / D)
        weight_hh = lin(self.w_hh, base_proj).reshape(WD, H) * math.sqrt(1.0 / H)
        bias_ih = lin(self.b_ih, base_proj).reshape(-1) * math.sqrt(1.0 / WD)
        bias_hh = lin(self.b_hh, base_proj).reshape(-1) * math.sqrt(1.0 / WD)
        return weight_ih, weight_hh, bias_ih, bias_hh

    def __call__(self, inp, base_proj):
        B, T, D = inp.shape
        H = self.rnn_units
        GP = ((H + 127) // 128) * 128     # per-gate lane slot (multiple of 128)
        weight_ih, weight_hh, bias_ih, bias_hh = self._make_gru_params(base_proj)

        def gate_rows(w, g):
            return w[g * H:(g + 1) * H]

        def pad_cols(m):                                   # (..., H) -> (..., GP)
            return jnp.pad(m, ((0, 0), (0, GP - H)))

        def pad_vec(v):                                    # (H,) -> (GP,)
            return jnp.pad(v, (0, GP - H))

        # Lane-aligned, contraction-dim-major, bf16 MXU weights.  Each gate gets
        # its own zero-padded GP-lane slot; zero padding keeps the padded lanes
        # of the carried hidden state exactly 0 for all time steps.
        wih_t = jnp.concatenate(
            [pad_cols(gate_rows(weight_ih, g).T) for g in range(3)], axis=1
        ).astype(jnp.bfloat16)                                         # (D, 3*GP)
        whh_t = jnp.pad(
            jnp.concatenate(
                [pad_cols(gate_rows(weight_hh, g).T) for g in range(3)], axis=1),
            ((0, GP - H), (0, 0))
        ).astype(jnp.bfloat16)                                         # (GP, 3*GP)

        # Hoisted bias: bih for all gates + bhh for r/z (foldable outside the
        # recurrence).  The n-gate's bhh stays separate (it is scaled by r).
        bias_fold = jnp.concatenate([
            pad_vec(bias_ih[0:H] + bias_hh[0:H]),
            pad_vec(bias_ih[H:2 * H] + bias_hh[H:2 * H]),
            pad_vec(bias_ih[2 * H:3 * H]),
        ]).reshape(1, 3 * GP).astype(jnp.float32)                      # (1, 3*GP)
        bhh_n = pad_vec(bias_hh[2 * H:3 * H]).reshape(1, GP).astype(jnp.float32)

        TT, Tp = _choose_time_block(T, H)
        # Stream activations as bf16 (they get rounded to bf16 for the MXU
        # anyway): halves input HBM traffic and double-buffered input VMEM.
        x = inp.astype(jnp.bfloat16)
        if Tp != T:
            x = jnp.pad(x, ((0, 0), (0, Tp - T), (0, 0)))   # pad T; extra steps
            # only run after all valid steps of a batch chunk -> harmless.

        # Split the batch only when it buys TensorCore parallelism (v7x) AND
        # each core keeps >= 8 sublanes of batch; on single-TC v5e/v6e BB = B
        # avoids doubled grid-step overhead and halved sublane utilization.
        BB = B // 2 if (B >= 16 and B % 16 == 0) else B
        grid = (B // BB, Tp // TT)

        est = _vmem_estimate(BB, TT, D, H, GP)
        vmem_limit = int(min(48 << 20, max(32 << 20, 4 * est)))  # v7x (64 MiB) safe

        # NOTE: h_scratch correctness requires the time axis to be the LAST
        # (innermost, sequential, "arbitrary") grid axis; the batch axis is the
        # only "parallel" one.  Do not reorder grid/dimension_semantics.
        out = pl.pallas_call(
            gru_kernel,
            out_shape=jax.ShapeDtypeStruct((B, Tp * H), jnp.float32),
            grid_spec=pltpu.PrefetchScalarGridSpec(
                num_scalar_prefetch=0,
                grid=grid,
                in_specs=[
                    pl.BlockSpec((BB, TT, D), lambda b, t: (b, t, 0)),
                    pl.BlockSpec((D, 3 * GP), lambda b, t: (0, 0)),
                    pl.BlockSpec((GP, 3 * GP), lambda b, t: (0, 0)),
                    pl.BlockSpec((1, 3 * GP), lambda b, t: (0, 0)),
                    pl.BlockSpec((1, GP), lambda b, t: (0, 0)),
                ],
                out_specs=pl.BlockSpec((BB, TT * H), lambda b, t: (b, t)),
                scratch_shapes=[pltpu.VMEM((BB, GP), jnp.float32)],
            ),
            compiler_params=pltpu.CompilerParams(
                dimension_semantics=("parallel", "arbitrary"),
                vmem_limit_bytes=vmem_limit,
            ),
        )(x, wih_t, whh_t, bias_fold, bhh_n)

        out = out.reshape(B, Tp, H)
        if Tp != T:
            out = out[:, :T, :]
        # (B, T, H), same layout as the PyTorch module's return value.
        return out


def gru_reference(inp, weight_ih, weight_hh, bias_ih, bias_hh, H,
                  matmul_dtype=jnp.float32):
    """Pure-JAX reference of the unrolled GRU cell (PyTorch gru_cell semantics).

    `matmul_dtype=bf16` mimics the kernel's bf16 MXU operands (accumulation and
    gate math stay f32 either way).
    """
    wih_t = weight_ih.T.astype(matmul_dtype)
    whh_t = weight_hh.T.astype(matmul_dtype)
    B = inp.shape[0]
    h0 = jnp.zeros((B, H), jnp.float32)

    def step(h, x_t):
        gi = jnp.dot(x_t.astype(matmul_dtype), wih_t,
                     preferred_element_type=jnp.float32) + bias_ih
        gh = jnp.dot(h.astype(matmul_dtype), whh_t,
                     preferred_element_type=jnp.float32) + bias_hh
        r = jax.nn.sigmoid(gi[:, :H] + gh[:, :H])
        z = jax.nn.sigmoid(gi[:, H:2 * H] + gh[:, H:2 * H])
        n = jnp.tanh(gi[:, 2 * H:] + r * gh[:, 2 * H:])
        h_new = (1.0 - z) * n + z * h
        return h_new, h_new

    _, outs = lax.scan(step, h0, jnp.transpose(inp, (1, 0, 2)))
    return jnp.transpose(outs, (1, 0, 2))


if __name__ == "__main__":
    # Small shapes consistent with the module's forward:
    B, T = 2, 8                 # batch, sequence length
    RNN_INPUT = 32              # d (feature dim of `input`)
    RNN_UNITS = 32              # H (hidden size)
    BASE_PROJ_CHANNELS = 16     # dim of the conditioning vector `base_proj`

    key = jax.random.PRNGKey(0)
    k_mod, k_x, k_bp = jax.random.split(key, 3)

    model = ProjRNNPallas(BASE_PROJ_CHANNELS, RNN_INPUT, RNN_UNITS, k_mod)

    x = jax.random.normal(k_x, (B, T, RNN_INPUT), jnp.float32)
    base_proj = jax.random.normal(k_bp, (BASE_PROJ_CHANNELS,), jnp.float32)

    out = model(x, base_proj)
    out = jax.block_until_ready(out)
    assert out.shape == (B, T, RNN_UNITS)

    wih, whh, bih, bhh = model._make_gru_params(base_proj)

    # Check against a reference using the same bf16 MXU operands (validates the
    # kernel mechanics: gate lane padding, bias fold, recurrence, output layout).
    # Tolerance allows f32 reassociation of the folded biases / blend form.
    ref_bf16 = gru_reference(x, wih, whh, bih, bhh, RNN_UNITS,
                             matmul_dtype=jnp.bfloat16)
    ref_bf16 = jax.block_until_ready(ref_bf16)
    assert jnp.allclose(out, ref_bf16, atol=1e-2, rtol=1e-2), (
        float(jnp.max(jnp.abs(out - ref_bf16)))
    )

    # Looser sanity check against full-f32 PyTorch-semantics math; the only
    # difference is bf16 rounding of the MXU operands (a deliberate perf choice).
    # TODO(synk): for very long sequences the bf16-rounded hidden state drifts;
    # switch the recurrence matmul LHS to f32 if long-T fidelity is required.
    ref_f32 = gru_reference(x, wih, whh, bih, bhh, RNN_UNITS,
                            matmul_dtype=jnp.float32)
    ref_f32 = jax.block_until_ready(ref_f32)
    assert jnp.allclose(out, ref_f32, atol=5e-2, rtol=5e-2), (
        float(jnp.max(jnp.abs(out - ref_f32)))
    )

    print("KERNEL_OK")
</pallas_src>

<mosaic_0001>
module attributes {stable_mosaic.version = 11 : i64} {
  func.func @gru_kernel(%arg0: i32, %arg1: i32, %arg2: memref<2x8x32xbf16, #tpu.memory_space<vmem>>, %arg3: memref<32x384xbf16, #tpu.memory_space<vmem>>, %arg4: memref<128x384xbf16, #tpu.memory_space<vmem>>, %arg5: memref<1x384xf32, #tpu.memory_space<vmem>>, %arg6: memref<1x128xf32, #tpu.memory_space<vmem>>, %arg7: memref<2x256xf32, #tpu.memory_space<vmem>>, %arg8: memref<2x128xf32, #tpu.memory_space<vmem>>) attributes {dimension_semantics = [#tpu.dimension_semantics<parallel>, #tpu.dimension_semantics<arbitrary>], iteration_bounds = array<i64: 1, 1>, scalar_prefetch = 0 : i64, scratch_operands = 1 : i64, tpu.core_type = #tpu.core_type<tc>, window_params = [{transform_indices = @transform_0, window_bounds = array<i64: 2, 8, 32>}, {pipeline_mode = #tpu.pipeline_mode<synchronous>, transform_indices = @transform_1, window_bounds = array<i64: 32, 384>}, {pipeline_mode = #tpu.pipeline_mode<synchronous>, transform_indices = @transform_2, window_bounds = array<i64: 128, 384>}, {pipeline_mode = #tpu.pipeline_mode<synchronous>, transform_indices = @transform_3, window_bounds = array<i64: 1, 384>}, {pipeline_mode = #tpu.pipeline_mode<synchronous>, transform_indices = @transform_4, window_bounds = array<i64: 1, 128>}, {transform_indices = @transform_5, window_bounds = array<i64: 2, 256>}]} {
    %c0_i32 = arith.constant 0 : i32
    %0 = arith.cmpi eq, %arg1, %c0_i32 : i32
    %1 = arith.extui %0 : i1 to i32
    %c0_i32_0 = arith.constant 0 : i32
    %2 = arith.cmpi ne, %1, %c0_i32_0 : i32
    scf.if %2 {
      %cst_48 = arith.constant 0.000000e+00 : f32
      %265 = vector.broadcast %cst_48 : f32 to vector<2x128xf32>
      %c0_49 = arith.constant 0 : index
      %c0_50 = arith.constant 0 : index
      %266 = vector.load %arg8[%c0_49, %c0_50] : memref<2x128xf32, #tpu.memory_space<vmem>>, vector<2x128xf32>
      tpu.vector_store %arg8[%c0_49, %c0_50], %265 {strides = array<i32>} : memref<2x128xf32, #tpu.memory_space<vmem>>, vector<2x128xf32>,
    } else {
    }
    %c0 = arith.constant 0 : index
    %c0_1 = arith.constant 0 : index
    %c0_2 = arith.constant 0 : index
    %3 = vector.load %arg2[%c0, %c0_1, %c0_2] : memref<2x8x32xbf16, #tpu.memory_space<vmem>>, vector<2x8x32xbf16>
    %4 = vector.shape_cast %3 : vector<2x8x32xbf16> to vector<16x32xbf16>
    %c0_3 = arith.constant 0 : index
    %c0_4 = arith.constant 0 : index
    %5 = vector.load %arg3[%c0_3, %c0_4] : memref<32x384xbf16, #tpu.memory_space<vmem>>, vector<32x384xbf16>
    %cst = arith.constant dense<0.000000e+00> : vector<16x384xf32>
    %6 = tpu.matmul %4, %5, %cst {dimension_numbers = #tpu.dot_dimension_numbers<[1], [0], [0], [1], [0, 0, 1, 1], [], []>} : vector<16x32xbf16>, vector<32x384xbf16>, vector<16x384xf32> -> vector<16x384xf32>
    %c0_5 = arith.constant 0 : index
    %c0_6 = arith.constant 0 : index
    %7 = vector.load %arg5[%c0_5, %c0_6] : memref<1x384xf32, #tpu.memory_space<vmem>>, vector<1x384xf32>
    %8 = vector.broadcast %7 : vector<1x384xf32> to vector<16x384xf32>
    %9 = arith.addf %6, %8 : vector<16x384xf32>
    %10 = vector.shape_cast %9 : vector<16x384xf32> to vector<2x8x384xf32>
    %c0_7 = arith.constant 0 : index
    %c0_8 = arith.constant 0 : index
    %11 = vector.load %arg4[%c0_7, %c0_8] : memref<128x384xbf16, #tpu.memory_space<vmem>>, vector<128x384xbf16>
    %c0_9 = arith.constant 0 : index
    %c0_10 = arith.constant 0 : index
    %12 = vector.load %arg6[%c0_9, %c0_10] : memref<1x128xf32, #tpu.memory_space<vmem>>, vector<1x128xf32>
    %13 = vector.shape_cast %12 : vector<1x128xf32> to vector<1x128xf32>
    %14 = vector.broadcast %13 : vector<1x128xf32> to vector<2x128xf32>
    %c0_11 = arith.constant 0 : index
    %c0_12 = arith.constant 0 : index
    %15 = vector.load %arg8[%c0_11, %c0_12] : memref<2x128xf32, #tpu.memory_space<vmem>>, vector<2x128xf32>
    %16 = vector.extract_strided_slice %10 {offsets = [0, 0, 0], sizes = [2, 1, 384], strides = [1, 1, 1]} : vector<2x8x384xf32> to vector<2x1x384xf32>
    %17 = vector.shape_cast %16 : vector<2x1x384xf32> to vector<2x384xf32>
    %18 = arith.truncf %15 : vector<2x128xf32> to vector<2x128xbf16>
    %cst_13 = arith.constant dense<0.000000e+00> : vector<2x384xf32>
    %19 = tpu.matmul %18, %11, %cst_13 {dimension_numbers = #tpu.dot_dimension_numbers<[1], [0], [0], [1], [0, 0, 1, 1], [], []>} : vector<2x128xbf16>, vector<128x384xbf16>, vector<2x384xf32> -> vector<2x384xf32>
    %20 = vector.extract_strided_slice %17 {offsets = [0, 0], sizes = [2, 128], strides = [1, 1]} : vector<2x384xf32> to vector<2x128xf32>
    %21 = vector.extract_strided_slice %19 {offsets = [0, 0], sizes = [2, 128], strides = [1, 1]} : vector<2x384xf32> to vector<2x128xf32>
    %22 = arith.addf %20, %21 : vector<2x128xf32>
    %23 = arith.negf %22 : vector<2x128xf32>
    %24 = math.exp %23 : vector<2x128xf32>
    %cst_14 = arith.constant 1.000000e+00 : f32
    %25 = vector.broadcast %cst_14 : f32 to vector<2x128xf32>
    %26 = arith.addf %25, %24 : vector<2x128xf32>
    %27 = arith.divf %25, %26 : vector<2x128xf32>
    %28 = vector.extract_strided_slice %17 {offsets = [0, 128], sizes = [2, 128], strides = [1, 1]} : vector<2x384xf32> to vector<2x128xf32>
    %29 = vector.extract_strided_slice %19 {offsets = [0, 128], sizes = [2, 128], strides = [1, 1]} : vector<2x384xf32> to vector<2x128xf32>
    %30 = arith.addf %28, %29 : vector<2x128xf32>
    %31 = arith.negf %30 : vector<2x128xf32>
    %32 = math.exp %31 : vector<2x128xf32>
    %cst_15 = arith.constant 1.000000e+00 : f32
    %33 = vector.broadcast %cst_15 : f32 to vector<2x128xf32>
    %34 = arith.addf %33, %32 : vector<2x128xf32>
    %35 = arith.divf %33, %34 : vector<2x128xf32>
    %36 = vector.extract_strided_slice %17 {offsets = [0, 256], sizes = [2, 128], strides = [1, 1]} : vector<2x384xf32> to vector<2x128xf32>
    %37 = vector.extract_strided_slice %19 {offsets = [0, 256], sizes = [2, 128], strides = [1, 1]} : vector<2x384xf32> to vector<2x128xf32>
    %38 = arith.addf %37, %14 : vector<2x128xf32>
    %39 = arith.mulf %27, %38 : vector<2x128xf32>
    %40 = arith.addf %36, %39 : vector<2x128xf32>
    %41 = math.tanh %40 : vector<2x128xf32>
    %42 = arith.subf %15, %41 : vector<2x128xf32>
    %43 = arith.mulf %35, %42 : vector<2x128xf32>
    %44 = arith.addf %41, %43 : vector<2x128xf32>
    %45 = vector.extract_strided_slice %44 {offsets = [0, 0], sizes = [2, 32], strides = [1, 1]} : vector<2x128xf32> to vector<2x32xf32>
    %c0_16 = arith.constant 0 : index
    %c0_17 = arith.constant 0 : index
    %46 = vector.load %arg7[%c0_16, %c0_17] : memref<2x256xf32, #tpu.memory_space<vmem>>, vector<2x32xf32>
    tpu.vector_store %arg7[%c0_16, %c0_17], %45 {strides = array<i32>} : memref<2x256xf32, #tpu.memory_space<vmem>>, vector<2x32xf32>,
    %47 = vector.extract_strided_slice %10 {offsets = [0, 1, 0], sizes = [2, 1, 384], strides = [1, 1, 1]} : vector<2x8x384xf32> to vector<2x1x384xf32>
    %48 = vector.shape_cast %47 : vector<2x1x384xf32> to vector<2x384xf32>
    %49 = arith.truncf %44 : vector<2x128xf32> to vector<2x128xbf16>
    %cst_18 = arith.constant dense<0.000000e+00> : vector<2x384xf32>
    %50 = tpu.matmul %49, %11, %cst_18 {dimension_numbers = #tpu.dot_dimension_numbers<[1], [0], [0], [1], [0, 0, 1, 1], [], []>} : vector<2x128xbf16>, vector<128x384xbf16>, vector<2x384xf32> -> vector<2x384xf32>
    %51 = vector.extract_strided_slice %48 {offsets = [0, 0], sizes = [2, 128], strides = [1, 1]} : vector<2x384xf32> to vector<2x128xf32>
    %52 = vector.extract_strided_slice %50 {offsets = [0, 0], sizes = [2, 128], strides = [1, 1]} : vector<2x384xf32> to vector<2x128xf32>
    %53 = arith.addf %51, %52 : vector<2x128xf32>
    %54 = arith.negf %53 : vector<2x128xf32>
    %55 = math.exp %54 : vector<2x128xf32>
    %cst_19 = arith.constant 1.000000e+00 : f32
    %56 = vector.broadcast %cst_19 : f32 to vector<2x128xf32>
    %57 = arith.addf %56, %55 : vector<2x128xf32>
    %58 = arith.divf %56, %57 : vector<2x128xf32>
    %59 = vector.extract_strided_slice %48 {offsets = [0, 128], sizes = [2, 128], strides = [1, 1]} : vector<2x384xf32> to vector<2x128xf32>
    %60 = vector.extract_strided_slice %50 {offsets = [0, 128], sizes = [2, 128], strides = [1, 1]} : vector<2x384xf32> to vector<2x128xf32>
    %61 = arith.addf %59, %60 : vector<2x128xf32>
    %62 = arith.negf %61 : vector<2x128xf32>
    %63 = math.exp %62 : vector<2x128xf32>
    %cst_20 = arith.constant 1.000000e+00 : f32
    %64 = vector.broadcast %cst_20 : f32 to vector<2x128xf32>
    %65 = arith.addf %64, %63 : vector<2x128xf32>
    %66 = arith.divf %64, %65 : vector<2x128xf32>
    %67 = vector.extract_strided_slice %48 {offsets = [0, 256], sizes = [2, 128], strides = [1, 1]} : vector<2x384xf32> to vector<2x128xf32>
    %68 = vector.extract_strided_slice %50 {offsets = [0, 256], sizes = [2, 128], strides = [1, 1]} : vector<2x384xf32> to vector<2x128xf32>
    %69 = arith.addf %68, %14 : vector<2x128xf32>
    %70 = arith.mulf %58, %69 : vector<2x128xf32>
    %71 = arith.addf %67, %70 : vector<2x128xf32>
    %72 = math.tanh %71 : vector<2x128xf32>
    %73 = arith.subf %44, %72 : vector<2x128xf32>
    %74 = arith.mulf %66, %73 : vector<2x128xf32>
    %75 = arith.addf %72, %74 : vector<2x128xf32>
    %76 = vector.extract_strided_slice %75 {offsets = [0, 0], sizes = [2, 32], strides = [1, 1]} : vector<2x128xf32> to vector<2x32xf32>
    %c0_21 = arith.constant 0 : index
    %c32 = arith.constant 32 : index
    %77 = vector.load %arg7[%c0_21, %c32] : memref<2x256xf32, #tpu.memory_space<vmem>>, vector<2x32xf32>
    tpu.vector_store %arg7[%c0_21, %c32], %76 {strides = array<i32>} : memref<2x256xf32, #tpu.memory_space<vmem>>, vector<2x32xf32>,
    %78 = vector.extract_strided_slice %10 {offsets = [0, 2, 0], sizes = [2, 1, 384], strides = [1, 1, 1]} : vector<2x8x384xf32> to vector<2x1x384xf32>
    %79 = vector.shape_cast %78 : vector<2x1x384xf32> to vector<2x384xf32>
    %80 = arith.truncf %75 : vector<2x128xf32> to vector<2x128xbf16>
    %cst_22 = arith.constant dense<0.000000e+00> : vector<2x384xf32>
    %81 = tpu.matmul %80, %11, %cst_22 {dimension_numbers = #tpu.dot_dimension_numbers<[1], [0], [0], [1], [0, 0, 1, 1], [], []>} : vector<2x128xbf16>, vector<128x384xbf16>, vector<2x384xf32> -> vector<2x384xf32>
    %82 = vector.extract_strided_slice %79 {offsets = [0, 0], sizes = [2, 128], strides = [1, 1]} : vector<2x384xf32> to vector<2x128xf32>
    %83 = vector.extract_strided_slice %81 {offsets = [0, 0], sizes = [2, 128], strides = [1, 1]} : vector<2x384xf32> to vector<2x128xf32>
    %84 = arith.addf %82, %83 : vector<2x128xf32>
    %85 = arith.negf %84 : vector<2x128xf32>
    %86 = math.exp %85 : vector<2x128xf32>
    %cst_23 = arith.constant 1.000000e+00 : f32
    %87 = vector.broadcast %cst_23 : f32 to vector<2x128xf32>
    %88 = arith.addf %87, %86 : vector<2x128xf32>
    %89 = arith.divf %87, %88 : vector<2x128xf32>
    %90 = vector.extract_strided_slice %79 {offsets = [0, 128], sizes = [2, 128], strides = [1, 1]} : vector<2x384xf32> to vector<2x128xf32>
    %91 = vector.extract_strided_slice %81 {offsets = [0, 128], sizes = [2, 128], strides = [1, 1]} : vector<2x384xf32> to vector<2x128xf32>
    %92 = arith.addf %90, %91 : vector<2x128xf32>
    %93 = arith.negf %92 : vector<2x128xf32>
    %94 = math.exp %93 : vector<2x128xf32>
    %cst_24 = arith.constant 1.000000e+00 : f32
    %95 = vector.broadcast %cst_24 : f32 to vector<2x128xf32>
    %96 = arith.addf %95, %94 : vector<2x128xf32>
    %97 = arith.divf %95, %96 : vector<2x128xf32>
    %98 = vector.extract_strided_slice %79 {offsets = [0, 256], sizes = [2, 128], strides = [1, 1]} : vector<2x384xf32> to vector<2x128xf32>
    %99 = vector.extract_strided_slice %81 {offsets = [0, 256], sizes = [2, 128], strides = [1, 1]} : vector<2x384xf32> to vector<2x128xf32>
    %100 = arith.addf %99, %14 : vector<2x128xf32>
    %101 = arith.mulf %89, %100 : vector<2x128xf32>
    %102 = arith.addf %98, %101 : vector<2x128xf32>
    %103 = math.tanh %102 : vector<2x128xf32>
    %104 = arith.subf %75, %103 : vector<2x128xf32>
    %105 = arith.mulf %97, %104 : vector<2x128xf32>
    %106 = arith.addf %103, %105 : vector<2x128xf32>
    %107 = vector.extract_strided_slice %106 {offsets = [0, 0], sizes = [2, 32], strides = [1, 1]} : vector<2x128xf32> to vector<2x32xf32>
    %c0_25 = arith.constant 0 : index
    %c64 = arith.constant 64 : index
    %108 = vector.load %arg7[%c0_25, %c64] : memref<2x256xf32, #tpu.memory_space<vmem>>, vector<2x32xf32>
    tpu.vector_store %arg7[%c0_25, %c64], %107 {strides = array<i32>} : memref<2x256xf32, #tpu.memory_space<vmem>>, vector<2x32xf32>,
    %109 = vector.extract_strided_slice %10 {offsets = [0, 3, 0], sizes = [2, 1, 384], strides = [1, 1, 1]} : vector<2x8x384xf32> to vector<2x1x384xf32>
    %110 = vector.shape_cast %109 : vector<2x1x384xf32> to vector<2x384xf32>
    %111 = arith.truncf %106 : vector<2x128xf32> to vector<2x128xbf16>
    %cst_26 = arith.constant dense<0.000000e+00> : vector<2x384xf32>
    %112 = tpu.matmul %111, %11, %cst_26 {dimension_numbers = #tpu.dot_dimension_numbers<[1], [0], [0], [1], [0, 0, 1, 1], [], []>} : vector<2x128xbf16>, vector<128x384xbf16>, vector<2x384xf32> -> vector<2x384xf32>
    %113 = vector.extract_strided_slice %110 {offsets = [0, 0], sizes = [2, 128], strides = [1, 1]} : vector<2x384xf32> to vector<2x128xf32>
    %114 = vector.extract_strided_slice %112 {offsets = [0, 0], sizes = [2, 128], strides = [1, 1]} : vector<2x384xf32> to vector<2x128xf32>
    %115 = arith.addf %113, %114 : vector<2x128xf32>
    %116 = arith.negf %115 : vector<2x128xf32>
    %117 = math.exp %116 : vector<2x128xf32>
    %cst_27 = arith.constant 1.000000e+00 : f32
    %118 = vector.broadcast %cst_27 : f32 to vector<2x128xf32>
    %119 = arith.addf %118, %117 : vector<2x128xf32>
    %120 = arith.divf %118, %119 : vector<2x128xf32>
    %121 = vector.extract_strided_slice %110 {offsets = [0, 128], sizes = [2, 128], strides = [1, 1]} : vector<2x384xf32> to vector<2x128xf32>
    %122 = vector.extract_strided_slice %112 {offsets = [0, 128], sizes = [2, 128], strides = [1, 1]} : vector<2x384xf32> to vector<2x128xf32>
    %123 = arith.addf %121, %122 : vector<2x128xf32>
    %124 = arith.negf %123 : vector<2x128xf32>
    %125 = math.exp %124 : vector<2x128xf32>
    %cst_28 = arith.constant 1.000000e+00 : f32
    %126 = vector.broadcast %cst_28 : f32 to vector<2x128xf32>
    %127 = arith.addf %126, %125 : vector<2x128xf32>
    %128 = arith.divf %126, %127 : vector<2x128xf32>
    %129 = vector.extract_strided_slice %110 {offsets = [0, 256], sizes = [2, 128], strides = [1, 1]} : vector<2x384xf32> to vector<2x128xf32>
    %130 = vector.extract_strided_slice %112 {offsets = [0, 256], sizes = [2, 128], strides = [1, 1]} : vector<2x384xf32> to vector<2x128xf32>
    %131 = arith.addf %130, %14 : vector<2x128xf32>
    %132 = arith.mulf %120, %131 : vector<2x128xf32>
    %133 = arith.addf %129, %132 : vector<2x128xf32>
    %134 = math.tanh %133 : vector<2x128xf32>
    %135 = arith.subf %106, %134 : vector<2x128xf32>
    %136 = arith.mulf %128, %135 : vector<2x128xf32>
    %137 = arith.addf %134, %136 : vector<2x128xf32>
    %138 = vector.extract_strided_slice %137 {offsets = [0, 0], sizes = [2, 32], strides = [1, 1]} : vector<2x128xf32> to vector<2x32xf32>
    %c0_29 = arith.constant 0 : index
    %c96 = arith.constant 96 : index
    %139 = vector.load %arg7[%c0_29, %c96] : memref<2x256xf32, #tpu.memory_space<vmem>>, vector<2x32xf32>
    tpu.vector_store %arg7[%c0_29, %c96], %138 {strides = array<i32>} : memref<2x256xf32, #tpu.memory_space<vmem>>, vector<2x32xf32>,
    %140 = vector.extract_strided_slice %10 {offsets = [0, 4, 0], sizes = [2, 1, 384], strides = [1, 1, 1]} : vector<2x8x384xf32> to vector<2x1x384xf32>
    %141 = vector.shape_cast %140 : vector<2x1x384xf32> to vector<2x384xf32>
    %142 = arith.truncf %137 : vector<2x128xf32> to vector<2x128xbf16>
    %cst_30 = arith.constant dense<0.000000e+00> : vector<2x384xf32>
    %143 = tpu.matmul %142, %11, %cst_30 {dimension_numbers = #tpu.dot_dimension_numbers<[1], [0], [0], [1], [0, 0, 1, 1], [], []>} : vector<2x128xbf16>, vector<128x384xbf16>, vector<2x384xf32> -> vector<2x384xf32>
    %144 = vector.extract_strided_slice %141 {offsets = [0, 0], sizes = [2, 128], strides = [1, 1]} : vector<2x384xf32> to vector<2x128xf32>
    %145 = vector.extract_strided_slice %143 {offsets = [0, 0], sizes = [2, 128], strides = [1, 1]} : vector<2x384xf32> to vector<2x128xf32>
    %146 = arith.addf %144, %145 : vector<2x128xf32>
    %147 = arith.negf %146 : vector<2x128xf32>
    %148 = math.exp %147 : vector<2x128xf32>
    %cst_31 = arith.constant 1.000000e+00 : f32
    %149 = vector.broadcast %cst_31 : f32 to vector<2x128xf32>
    %150 = arith.addf %149, %148 : vector<2x128xf32>
    %151 = arith.divf %149, %150 : vector<2x128xf32>
    %152 = vector.extract_strided_slice %141 {offsets = [0, 128], sizes = [2, 128], strides = [1, 1]} : vector<2x384xf32> to vector<2x128xf32>
    %153 = vector.extract_strided_slice %143 {offsets = [0, 128], sizes = [2, 128], strides = [1, 1]} : vector<2x384xf32> to vector<2x128xf32>
    %154 = arith.addf %152, %153 : vector<2x128xf32>
    %155 = arith.negf %154 : vector<2x128xf32>
    %156 = math.exp %155 : vector<2x128xf32>
    %cst_32 = arith.constant 1.000000e+00 : f32
    %157 = vector.broadcast %cst_32 : f32 to vector<2x128xf32>
    %158 = arith.addf %157, %156 : vector<2x128xf32>
    %159 = arith.divf %157, %158 : vector<2x128xf32>
    %160 = vector.extract_strided_slice %141 {offsets = [0, 256], sizes = [2, 128], strides = [1, 1]} : vector<2x384xf32> to vector<2x128xf32>
    %161 = vector.extract_strided_slice %143 {offsets = [0, 256], sizes = [2, 128], strides = [1, 1]} : vector<2x384xf32> to vector<2x128xf32>
    %162 = arith.addf %161, %14 : vector<2x128xf32>
    %163 = arith.mulf %151, %162 : vector<2x128xf32>
    %164 = arith.addf %160, %163 : vector<2x128xf32>
    %165 = math.tanh %164 : vector<2x128xf32>
    %166 = arith.subf %137, %165 : vector<2x128xf32>
    %167 = arith.mulf %159, %166 : vector<2x128xf32>
    %168 = arith.addf %165, %167 : vector<2x128xf32>
    %169 = vector.extract_strided_slice %168 {offsets = [0, 0], sizes = [2, 32], strides = [1, 1]} : vector<2x128xf32> to vector<2x32xf32>
    %c0_33 = arith.constant 0 : index
    %c128 = arith.constant 128 : index
    %170 = vector.load %arg7[%c0_33, %c128] : memref<2x256xf32, #tpu.memory_space<vmem>>, vector<2x32xf32>
    tpu.vector_store %arg7[%c0_33, %c128], %169 {strides = array<i32>} : memref<2x256xf32, #tpu.memory_space<vmem>>, vector<2x32xf32>,
    %171 = vector.extract_strided_slice %10 {offsets = [0, 5, 0], sizes = [2, 1, 384], strides = [1, 1, 1]} : vector<2x8x384xf32> to vector<2x1x384xf32>
    %172 = vector.shape_cast %171 : vector<2x1x384xf32> to vector<2x384xf32>
    %173 = arith.truncf %168 : vector<2x128xf32> to vector<2x128xbf16>
    %cst_34 = arith.constant dense<0.000000e+00> : vector<2x384xf32>
    %174 = tpu.matmul %173, %11, %cst_34 {dimension_numbers = #tpu.dot_dimension_numbers<[1], [0], [0], [1], [0, 0, 1, 1], [], []>} : vector<2x128xbf16>, vector<128x384xbf16>, vector<2x384xf32> -> vector<2x384xf32>
    %175 = vector.extract_strided_slice %172 {offsets = [0, 0], sizes = [2, 128], strides = [1, 1]} : vector<2x384xf32> to vector<2x128xf32>
    %176 = vector.extract_strided_slice %174 {offsets = [0, 0], sizes = [2, 128], strides = [1, 1]} : vector<2x384xf32> to vector<2x128xf32>
    %177 = arith.addf %175, %176 : vector<2x128xf32>
    %178 = arith.negf %177 : vector<2x128xf32>
    %179 = math.exp %178 : vector<2x128xf32>
    %cst_35 = arith.constant 1.000000e+00 : f32
    %180 = vector.broadcast %cst_35 : f32 to vector<2x128xf32>
    %181 = arith.addf %180, %179 : vector<2x128xf32>
    %182 = arith.divf %180, %181 : vector<2x128xf32>
    %183 = vector.extract_strided_slice %172 {offsets = [0, 128], sizes = [2, 128], strides = [1, 1]} : vector<2x384xf32> to vector<2x128xf32>
    %184 = vector.extract_strided_slice %174 {offsets = [0, 128], sizes = [2, 128], strides = [1, 1]} : vector<2x384xf32> to vector<2x128xf32>
    %185 = arith.addf %183, %184 : vector<2x128xf32>
    %186 = arith.negf %185 : vector<2x128xf32>
    %187 = math.exp %186 : vector<2x128xf32>
    %cst_36 = arith.constant 1.000000e+00 : f32
    %188 = vector.broadcast %cst_36 : f32 to vector<2x128xf32>
    %189 = arith.addf %188, %187 : vector<2x128xf32>
    %190 = arith.divf %188, %189 : vector<2x128xf32>
    %191 = vector.extract_strided_slice %172 {offsets = [0, 256], sizes = [2, 128], strides = [1, 1]} : vector<2x384xf32> to vector<2x128xf32>
    %192 = vector.extract_strided_slice %174 {offsets = [0, 256], sizes = [2, 128], strides = [1, 1]} : vector<2x384xf32> to vector<2x128xf32>
    %193 = arith.addf %192, %14 : vector<2x128xf32>
    %194 = arith.mulf %182, %193 : vector<2x128xf32>
    %195 = arith.addf %191, %194 : vector<2x128xf32>
    %196 = math.tanh %195 : vector<2x128xf32>
    %197 = arith.subf %168, %196 : vector<2x128xf32>
    %198 = arith.mulf %190, %197 : vector<2x128xf32>
    %199 = arith.addf %196, %198 : vector<2x128xf32>
    %200 = vector.extract_strided_slice %199 {offsets = [0, 0], sizes = [2, 32], strides = [1, 1]} : vector<2x128xf32> to vector<2x32xf32>
    %c0_37 = arith.constant 0 : index
    %c160 = arith.constant 160 : index
    %201 = vector.load %arg7[%c0_37, %c160] : memref<2x256xf32, #tpu.memory_space<vmem>>, vector<2x32xf32>
    tpu.vector_store %arg7[%c0_37, %c160], %200 {strides = array<i32>} : memref<2x256xf32, #tpu.memory_space<vmem>>, vector<2x32xf32>,
    %202 = vector.extract_strided_slice %10 {offsets = [0, 6, 0], sizes = [2, 1, 384], strides = [1, 1, 1]} : vector<2x8x384xf32> to vector<2x1x384xf32>
    %203 = vector.shape_cast %202 : vector<2x1x384xf32> to vector<2x384xf32>
    %204 = arith.truncf %199 : vector<2x128xf32> to vector<2x128xbf16>
    %cst_38 = arith.constant dense<0.000000e+00> : vector<2x384xf32>
    %205 = tpu.matmul %204, %11, %cst_38 {dimension_numbers = #tpu.dot_dimension_numbers<[1], [0], [0], [1], [0, 0, 1, 1], [], []>} : vector<2x128xbf16>, vector<128x384xbf16>, vector<2x384xf32> -> vector<2x384xf32>
    %206 = vector.extract_strided_slice %203 {offsets = [0, 0], sizes = [2, 128], strides = [1, 1]} : vector<2x384xf32> to vector<2x128xf32>
    %207 = vector.extract_strided_slice %205 {offsets = [0, 0], sizes = [2, 128], strides = [1, 1]} : vector<2x384xf32> to vector<2x128xf32>
    %208 = arith.addf %206, %207 : vector<2x128xf32>
    %209 = arith.negf %208 : vector<2x128xf32>
    %210 = math.exp %209 : vector<2x128xf32>
    %cst_39 = arith.constant 1.000000e+00 : f32
    %211 = vector.broadcast %cst_39 : f32 to vector<2x128xf32>
    %212 = arith.addf %211, %210 : vector<2x128xf32>
    %213 = arith.divf %211, %212 : vector<2x128xf32>
    %214 = vector.extract_strided_slice %203 {offsets = [0, 128], sizes = [2, 128], strides = [1, 1]} : vector<2x384xf32> to vector<2x128xf32>
    %215 = vector.extract_strided_slice %205 {offsets = [0, 128], sizes = [2, 128], strides = [1, 1]} : vector<2x384xf32> to vector<2x128xf32>
    %216 = arith.addf %214, %215 : vector<2x128xf32>
    %217 = arith.negf %216 : vector<2x128xf32>
    %218 = math.exp %217 : vector<2x128xf32>
    %cst_40 = arith.constant 1.000000e+00 : f32
    %219 = vector.broadcast %cst_40 : f32 to vector<2x128xf32>
    %220 = arith.addf %219, %218 : vector<2x128xf32>
    %221 = arith.divf %219, %220 : vector<2x128xf32>
    %222 = vector.extract_strided_slice %203 {offsets = [0, 256], sizes = [2, 128], strides = [1, 1]} : vector<2x384xf32> to vector<2x128xf32>
    %223 = vector.extract_strided_slice %205 {offsets = [0, 256], sizes = [2, 128], strides = [1, 1]} : vector<2x384xf32> to vector<2x128xf32>
    %224 = arith.addf %223, %14 : vector<2x128xf32>
    %225 = arith.mulf %213, %224 : vector<2x128xf32>
    %226 = arith.addf %222, %225 : vector<2x128xf32>
    %227 = math.tanh %226 : vector<2x128xf32>
    %228 = arith.subf %199, %227 : vector<2x128xf32>
    %229 = arith.mulf %221, %228 : vector<2x128xf32>
    %230 = arith.addf %227, %229 : vector<2x128xf32>
    %231 = vector.extract_strided_slice %230 {offsets = [0, 0], sizes = [2, 32], strides = [1, 1]} : vector<2x128xf32> to vector<2x32xf32>
    %c0_41 = arith.constant 0 : index
    %c192 = arith.constant 192 : index
    %232 = vector.load %arg7[%c0_41, %c192] : memref<2x256xf32, #tpu.memory_space<vmem>>, vector<2x32xf32>
    tpu.vector_store %arg7[%c0_41, %c192], %231 {strides = array<i32>} : memref<2x256xf32, #tpu.memory_space<vmem>>, vector<2x32xf32>,
    %233 = vector.extract_strided_slice %10 {offsets = [0, 7, 0], sizes = [2, 1, 384], strides = [1, 1, 1]} : vector<2x8x384xf32> to vector<2x1x384xf32>
    %234 = vector.shape_cast %233 : vector<2x1x384xf32> to vector<2x384xf32>
    %235 = arith.truncf %230 : vector<2x128xf32> to vector<2x128xbf16>
    %cst_42 = arith.constant dense<0.000000e+00> : vector<2x384xf32>
    %236 = tpu.matmul %235, %11, %cst_42 {dimension_numbers = #tpu.dot_dimension_numbers<[1], [0], [0], [1], [0, 0, 1, 1], [], []>} : vector<2x128xbf16>, vector<128x384xbf16>, vector<2x384xf32> -> vector<2x384xf32>
    %237 = vector.extract_strided_slice %234 {offsets = [0, 0], sizes = [2, 128], strides = [1, 1]} : vector<2x384xf32> to vector<2x128xf32>
    %238 = vector.extract_strided_slice %236 {offsets = [0, 0], sizes = [2, 128], strides = [1, 1]} : vector<2x384xf32> to vector<2x128xf32>
    %239 = arith.addf %237, %238 : vector<2x128xf32>
    %240 = arith.negf %239 : vector<2x128xf32>
    %241 = math.exp %240 : vector<2x128xf32>
    %cst_43 = arith.constant 1.000000e+00 : f32
    %242 = vector.broadcast %cst_43 : f32 to vector<2x128xf32>
    %243 = arith.addf %242, %241 : vector<2x128xf32>
    %244 = arith.divf %242, %243 : vector<2x128xf32>
    %245 = vector.extract_strided_slice %234 {offsets = [0, 128], sizes = [2, 128], strides = [1, 1]} : vector<2x384xf32> to vector<2x128xf32>
    %246 = vector.extract_strided_slice %236 {offsets = [0, 128], sizes = [2, 128], strides = [1, 1]} : vector<2x384xf32> to vector<2x128xf32>
    %247 = arith.addf %245, %246 : vector<2x128xf32>
    %248 = arith.negf %247 : vector<2x128xf32>
    %249 = math.exp %248 : vector<2x128xf32>
    %cst_44 = arith.constant 1.000000e+00 : f32
    %250 = vector.broadcast %cst_44 : f32 to vector<2x128xf32>
    %251 = arith.addf %250, %249 : vector<2x128xf32>
    %252 = arith.divf %250, %251 : vector<2x128xf32>
    %253 = vector.extract_strided_slice %234 {offsets = [0, 256], sizes = [2, 128], strides = [1, 1]} : vector<2x384xf32> to vector<2x128xf32>
    %254 = vector.extract_strided_slice %236 {offsets = [0, 256], sizes = [2, 128], strides = [1, 1]} : vector<2x384xf32> to vector<2x128xf32>
    %255 = arith.addf %254, %14 : vector<2x128xf32>
    %256 = arith.mulf %244, %255 : vector<2x128xf32>
    %257 = arith.addf %253, %256 : vector<2x128xf32>
    %258 = math.tanh %257 : vector<2x128xf32>
    %259 = arith.subf %230, %258 : vector<2x128xf32>
    %260 = arith.mulf %252, %259 : vector<2x128xf32>
    %261 = arith.addf %258, %260 : vector<2x128xf32>
    %262 = vector.extract_strided_slice %261 {offsets = [0, 0], sizes = [2, 32], strides = [1, 1]} : vector<2x128xf32> to vector<2x32xf32>
    %c0_45 = arith.constant 0 : index
    %c224 = arith.constant 224 : index
    %263 = vector.load %arg7[%c0_45, %c224] : memref<2x256xf32, #tpu.memory_space<vmem>>, vector<2x32xf32>
    tpu.vector_store %arg7[%c0_45, %c224], %262 {strides = array<i32>} : memref<2x256xf32, #tpu.memory_space<vmem>>, vector<2x32xf32>,
    %c0_46 = arith.constant 0 : index
    %c0_47 = arith.constant 0 : index
    %264 = vector.load %arg8[%c0_46, %c0_47] : memref<2x128xf32, #tpu.memory_space<vmem>>, vector<2x128xf32>
    tpu.vector_store %arg8[%c0_46, %c0_47], %261 {strides = array<i32>} : memref<2x128xf32, #tpu.memory_space<vmem>>, vector<2x128xf32>,
    return
  }
  func.func @transform_0(%arg0: i32, %arg1: i32) -> (i32, i32, i32) {
    %c0_i32 = arith.constant 0 : i32
    %c0_i32_0 = arith.constant 0 : i32
    return %arg0, %arg1, %c0_i32 : i32, i32, i32
  }
  func.func @transform_1(%arg0: i32, %arg1: i32) -> (i32, i32) {
    %c0_i32 = arith.constant 0 : i32
    %c0_i32_0 = arith.constant 0 : i32
    %c0_i32_1 = arith.constant 0 : i32
    return %c0_i32, %c0_i32_0 : i32, i32
  }
  func.func @transform_2(%arg0: i32, %arg1: i32) -> (i32, i32) {
    %c0_i32 = arith.constant 0 : i32
    %c0_i32_0 = arith.constant 0 : i32
    %c0_i32_1 = arith.constant 0 : i32
    return %c0_i32, %c0_i32_0 : i32, i32
  }
  func.func @transform_3(%arg0: i32, %arg1: i32) -> (i32, i32) {
    %c0_i32 = arith.constant 0 : i32
    %c0_i32_0 = arith.constant 0 : i32
    %c0_i32_1 = arith.constant 0 : i32
    return %c0_i32, %c0_i32_0 : i32, i32
  }
  func.func @transform_4(%arg0: i32, %arg1: i32) -> (i32, i32) {
    %c0_i32 = arith.constant 0 : i32
    %c0_i32_0 = arith.constant 0 : i32
    %c0_i32_1 = arith.constant 0 : i32
    return %c0_i32, %c0_i32_0 : i32, i32
  }
  func.func @transform_5(%arg0: i32, %arg1: i32) -> (i32, i32) {
    %c0_i32 = arith.constant 0 : i32
    return %arg0, %arg1 : i32, i32
  }
}

</mosaic_0001>

<bundles_post_ra>
// kernel: tpu_custom_call.1
= control target key start
LH: loop header
LB: loop body
LE: loop exit
PB: predicated region body
PF: predicated region fallthrough
CT: control target
= control target key end

     0   :  { %10 = vsyncpa [#allocation4], 0  ;;  %s3286_s0 = inlined_call_operand.hbm [shape: bf16[2,8,32], index: 0, kind: input, shape index: {}]   ;;  %s3287_s1 = inlined_call_operand.hbm [shape: bf16[32,384], index: 1, kind: input, shape index: {}]   ;;  %s3288_s2 = inlined_call_operand.hbm [shape: bf16[128,384], index: 2, kind: input, shape index: {}]   ;;  %s3289_s3 = inlined_call_operand.vmem [shape: f32[1,384], index: 3, kind: input, shape index: {}]   ;;  %s3290_s4 = inlined_call_operand.vmem [shape: f32[1,128], index: 4, kind: input, shape index: {}]   ;;  %s3291_s5 = inlined_call_operand.hbm [shape: f32[2,256], index: 5, kind: output, shape index: {}]  }
   0x1   :  { %11 = vsyncpa [#allocation7], 0 }
   0x2   :  { %12 = vsyncpa [#allocation5], 0  ;;  %s2548_s18 = smov [#allocation6]   ;;  %s2454_s22 = scalar_lea.hbm %s3287_s1, 768 }
   0x3   :  { %s30_s19 = sshll.u32 %s2548_s18, 4  ;;  %p2455_p0 = scmp.ne.s32.totalorder %s3287_s1, %s2454_s22  ;;  %s31_s19 = int_to_ptr.vmem [resolvable:$true] %s30_s19 }
   0x4   :  { %p2458_p1 = scmp.lt.u32.totalorder %s2454_s22, %s3287_s1 }
   0x6   :  { %p2460_p2 = pnand %p2458_p1, %p2455_p0 }
   0x8   :  { %2463 = shalt.err (!%p2460_p2)
}
   0x9   :  { %s2464_s27 = scalar_lea.vmem %s31_s19, 768  ;;  %p2469_p4 = scmp.lt.s32.totalorder %s31_s19, %s31_s19 }
   0xa   :  { %p2465_p3 = scmp.ne.s32.totalorder %s31_s19, %s2464_s27  ;;  %p2470_p5 = scmp.lt.s32.totalorder %s2464_s27, %s2464_s27 }
   0xc   :  { %p2471_p6 = por %p2470_p5, %p2469_p4 }
   0xe   :  { %p2472_p7 = pnand %p2471_p6, %p2465_p3 }
  0x10   :  { %2475 = shalt.err (!%p2472_p7)
}
  0x11   :  { %s2549_s28 = smov 192   ;;  %s2550_s29 = smov 12  }
  0x12   :  { %36 = dma.hbm_to_vmem [thread:$0]  %s3287_s1, 768, %s31_s19, [#allocation7], %s2549_s28, %s2549_s28, %s2550_s29  }
  0x13   :  { %s2551_s7 = smov [#allocation3]   ;;  %s2476_s11 = scalar_lea.hbm %s3286_s0, 128 }
  0x14   :  { %s18_s8 = sshll.u32 %s2551_s7, 4  ;;  %p2477_p8 = scmp.ne.s32.totalorder %s3286_s0, %s2476_s11  ;;  %s19_s8 = int_to_ptr.vmem [resolvable:$true] %s18_s8 }
  0x15   :  { %p2480_p9 = scmp.lt.u32.totalorder %s2476_s11, %s3286_s0 }
  0x17   :  { %p2482_p10 = pnand %p2480_p9, %p2477_p8 }
  0x19   :  { %2485 = shalt.err (!%p2482_p10)
}
  0x1a   :  { %s2486_s16 = scalar_lea.vmem %s19_s8, 128  ;;  %p2491_p12 = scmp.lt.s32.totalorder %s19_s8, %s19_s8 }
  0x1b   :  { %p2487_p11 = scmp.ne.s32.totalorder %s19_s8, %s2486_s16  ;;  %p2492_p13 = scmp.lt.s32.totalorder %s2486_s16, %s2486_s16 }
  0x1d   :  { %p2493_p0 = por %p2492_p13, %p2491_p12 }
  0x1f   :  { %p2494_p1 = pnand %p2493_p0, %p2487_p11 }
  0x21   :  { %2497 = shalt.err (!%p2494_p1)
}
  0x22   :  { %s2552_s1 = smov 64   ;;  %s2553_s17 = smov 4  }
  0x23   :  { %24 = dma.hbm_to_vmem [thread:$0]  %s3286_s0, 128, %s19_s8, [#allocation4], %s2552_s1, %s2552_s1, %s2553_s17  }
  0x24   :  { %s2554_s20 = smov [#allocation8]   ;;  %s2498_s24 = scalar_lea.hbm %s3288_s2, 3072 }
  0x25   :  { %s42_s21 = sshll.u32 %s2554_s20, 4  ;;  %p2499_p2 = scmp.ne.s32.totalorder %s3288_s2, %s2498_s24  ;;  %s43_s21 = int_to_ptr.vmem [resolvable:$true] %s42_s21 }
  0x26   :  { %p2502_p3 = scmp.lt.u32.totalorder %s2498_s24, %s3288_s2 }
  0x28   :  { %p2504_p4 = pnand %p2502_p3, %p2499_p2 }
  0x2a   :  { %2507 = shalt.err (!%p2504_p4)
}
  0x2b   :  { %s2508_s6 = scalar_lea.vmem %s43_s21, 3072  ;;  %p2513_p6 = scmp.lt.s32.totalorder %s43_s21, %s43_s21 }
  0x2c   :  { %p2509_p5 = scmp.ne.s32.totalorder %s43_s21, %s2508_s6  ;;  %p2514_p7 = scmp.lt.s32.totalorder %s2508_s6, %s2508_s6 }
  0x2e   :  { %p2515_p8 = por %p2514_p7, %p2513_p6 }
  0x30   :  { %p2516_p9 = pnand %p2515_p8, %p2509_p5 }
  0x32   :  { %2519 = shalt.err (!%p2516_p9)
}
  0x33   :  { %48 = dma.hbm_to_vmem [thread:$0]  %s3288_s2, 3072, %s43_s21, [#allocation7], %s2549_s28, %s2549_s28, %s2550_s29  }
  0x34   :  { %2542 = dma.done.wait [#allocation4], 128  }
  0x35   :  { %2543 = vsyncadd [#allocation4], 4294967168 }
  0x36   :  { %2544 = dma.done.wait [#allocation7], 3840  }
  0x37   :  { %2545 = vsyncadd [#allocation7], 4294963456  ;;  %v2555_v0 = vmov 0   ;;  %v2556_v1 = vmov 0.0   ;;  %vm2557_vm0 = vmmov 0   ;;  %v2234_v7 = vld [vmem:[#allocation3] sm:$0xff]   ;;  %v80_v43 = vlaneseq }
  0x38   :  { %168 = vmatprep.mubr.bf16.mxu0 %v2555_v0  ;;  %2046 = vmatprep.subr.bf16.mxu1 %v2556_v1  ;;  %67 = vst [vmem:[#allocation2] sm:$0x3] %v2556_v1  ;;  %v2228_v2 = vld [vmem:[#allocation6 + $0x4] ss:$12 sps:$4 sm:$0xff]   ;;  %v2230_v3 = vld [vmem:[#allocation6] ss:$12 sps:$4 sm:$0xff]  }
  0x39   :  { %2050 = vmatprep.mubr.msk.bf16.mxu1 %vm2557_vm0, %v2556_v1  ;;  %136 = vmatprep.subr.bf16.mxu0 %v2228_v2  ;;  %v2231_v4 = vld [vmem:[#allocation6 + $0x1c] ss:$12 sps:$4 sm:$0xff]   ;;  %v2233_v5 = vld [vmem:[#allocation6 + $0x18] ss:$12 sps:$4 sm:$0xff]   ;;  %v2641_v6 = vld [vmem:[#allocation8 + $0x4] ss:$12 sps:$4 sm:$0xff]  }
  0x3a   :  { %137 = vmatpush1.bf16.msra.mxu0 %v2230_v3  ;;  %vm132_vm1 = vcmask 261120   ;;  %v2643_v8 = vld [vmem:[#allocation8] ss:$12 sps:$4 sm:$0xff]   ;;  %v2646_v9 = vld [vmem:[#allocation8 + $0x1c] ss:$12 sps:$4 sm:$0xff]   ;;  %v2768_v44 = vshrl.u32 %v80_v43, 7 }
  0x3b   :  { %138 = vmatprep.subr.bf16.mxu0 %v2231_v4  ;;  %v2247_v10 = vld [vmem:[#allocation6 + $0x8] ss:$12 sps:$4 sm:$0xff]   ;;  %v2652_v12 = vld [vmem:[#allocation8 + $0x34] ss:$12 sps:$4 sm:$0xff]   ;;  %v2251_v13 = vld [vmem:[#allocation6 + $0x20] ss:$12 sps:$4 sm:$0xff]  }
  0x3c   :  { %v2649_v11 = vld [vmem:[#allocation8 + $0x18] ss:$12 sps:$4 sm:$0xff]   ;;  %2047 = vmatpush3.bf16.msra.mxu1 %v2247_v10  ;;  %v2658_v14 = vld [vmem:[#allocation8 + $0x30] ss:$12 sps:$4 sm:$0xff]   ;;  %v2660_v15 = vld [vmem:[#allocation8 + $0x8] ss:$12 sps:$4 sm:$0xff]  }
  0x3d   :  { %2048 = vmatprep.subr.bf16.mxu1 %v2556_v1  ;;  %v2663_v16 = vld [vmem:[#allocation8 + $0x4c] ss:$12 sps:$4 sm:$0xff]   ;;  %v2666_v17 = vld [vmem:[#allocation8 + $0x48] ss:$12 sps:$4 sm:$0xff]   ;;  %v2674_v19 = vld [vmem:[#allocation8 + $0x64] ss:$12 sps:$4 sm:$0xff]  }
  0x3e   :  { %139 = vmatpush1.bf16.msra.mxu0 %v2233_v5  ;;  %v2671_v18 = vld [vmem:[#allocation8 + $0x20] ss:$12 sps:$4 sm:$0xff]   ;;  %v2683_v21 = vld [vmem:[#allocation8 + $0x38] ss:$12 sps:$4 sm:$0xff]   ;;  %v2686_v22 = vld [vmem:[#allocation8 + $0x7c] ss:$12 sps:$4 sm:$0xff]  }
  0x3f   :  { %389 = vmatprep.subr.bf16.mxu0 %v2641_v6  ;;  %v2679_v20 = vld [vmem:[#allocation8 + $0x60] ss:$12 sps:$4 sm:$0xff]   ;;  %v2690_v23 = vld [vmem:[#allocation8 + $0x78] ss:$12 sps:$4 sm:$0xff]   ;;  %v2693_v24 = vld [vmem:[#allocation8 + $0x50] ss:$12 sps:$4 sm:$0xff]  }
  0x40   :  { %2049 = vmatpush3.bf16.msra.mxu1 %v2251_v13  ;;  %v2696_v25 = vld [vmem:[#allocation8 + $0x94] ss:$12 sps:$4 sm:$0xff]   ;;  %v2700_v26 = vld [vmem:[#allocation8 + $0x90] ss:$12 sps:$4 sm:$0xff]   ;;  %v2706_v28 = vld [vmem:[#allocation8 + $0xac] ss:$12 sps:$4 sm:$0xff]  }
  0x41   :  { %1912 = vmatmul.mubr.msk.bf16.vlgmr.msra.gmra.mrb[0].mxu0 %vm132_vm1, %v2234_v7  ;;  %2054 = vmatprep.subr.bf16.mxu1 %v2556_v1  ;;  %v2703_v27 = vld [vmem:[#allocation8 + $0x68] ss:$12 sps:$4 sm:$0xff]   ;;  %v2712_v30 = vld [vmem:[#allocation2] sm:$0x3]  ;;  %v2715_v31 = vld [vmem:[#allocation8 + $0x80] ss:$12 sps:$4 sm:$0xff]  }
  0x42   :  { %390 = vmatpush1.bf16.msra.mxu0 %v2643_v8  ;;  %421 = vmatprep.mubr.bf16.mxu0 %v2555_v0  ;;  %v2710_v29 = vld [vmem:[#allocation8 + $0xa8] ss:$12 sps:$4 sm:$0xff]   ;;  %v260_v32 = vpack.c.bf16 %v2712_v30, %v2712_v30  ;;  %v2723_v33 = vld [vmem:[#allocation8 + $0x98] ss:$12 sps:$4 sm:$0xff]   ;;  %v2728_v34 = vld [vmem:[#allocation8 + $0xb0] ss:$12 sps:$4 sm:$0xff]  }
  0x43   :  { %391 = vmatprep.subr.bf16.mxu0 %v2646_v9  ;;  %2051 = vmatmul.mubr.msk.bf16.vlgmr.msra.gmra.mrb[0].mxu1 %vm132_vm1, %v2234_v7  ;;  %v82_v45 = vsub.s32 0, %v2768_v44  ;;  %v78_v46 = vld [vmem:[%s3289_s3] sm:$0x7]  ;;  %v86_v58 = vsub.s32 1, %v2768_v44  ;;  %v90_v43 = vsub.s32 2, %v2768_v44  ;;  %vm520_vm2 = vcmask 1041409  }
  0x44   :  { %2055 = vmatpush3.bf16.msra.mxu1 %v2660_v15  ;;  %2070 = vmatprep.mubr.msk.bf16.mxu1 %vm2557_vm0, %v2556_v1  ;;  %vm554_vm3 = vcmask 1043459   ;;  %vm556_vm4 = vcmask 1045509   ;;  %vm558_vm5 = vcmask 1047559   ;;  %vm561_vm6 = vcmask 254976   ;;  %s2559_s8 = smov 32   ;;  %s2561_s11 = smov [#allocation9]  }
  0x45   :  { %2056 = vmatprep.subr.bf16.mxu1 %v2556_v1  ;;  %v83_v47 = vrot.slane %v78_v46, %v82_v45  ;;  %v87_v61 = vrot.slane %v78_v46, %v86_v58  ;;  %v91_v45 = vrot.slane %v78_v46, %v90_v43  ;;  %vm745_vm7 = vcmask 517376   ;;  %s1895_s12 = sshll.u32 %s2561_s11, 4  ;;  %s1896_s12 = int_to_ptr.vmem [resolvable:$true] %s1895_s12 }
  0x46   :  { %392 = vmatpush1.bf16.msra.mxu0 %v2649_v11  ;;  %vm934_vm8 = vcmask 779776   ;;  %vm1124_vm9 = vcmask 1042176   ;;  %s2520_s13 = scalar_lea.vmem %s1896_s12, 64  ;;  %p2525_p11 = scmp.lt.s32.totalorder %s1896_s12, %s1896_s12 }
  0x47   :  { %393 = vmatprep.subr.bf16.mxu0 %v2652_v12  ;;  %p2521_p10 = scmp.ne.s32.totalorder %s1896_s12, %s2520_s13  ;;  %p2526_p12 = scmp.lt.s32.totalorder %s2520_s13, %s2520_s13 }
  0x48   :  { %2057 = vmatpush3.bf16.msra.mxu1 %v2671_v18 }
  0x49   :  { %2058 = vmatprep.subr.bf16.mxu1 %v2556_v1  ;;  %p2527_p13 = por %p2526_p12, %p2525_p11 }
  0x4a   :  { %394 = vmatpush1.bf16.msra.mxu0 %v2658_v14 }
  0x4b   :  { %395 = vmatprep.subr.bf16.mxu0 %v2663_v16  ;;  %p2528_p0 = pnand %p2527_p13, %p2521_p10 }
  0x4c   :  { %2059 = vmatpush3.bf16.msra.mxu1 %v2683_v21 }
  0x4d   :  { %2060 = vmatprep.subr.bf16.mxu1 %v2556_v1 }
  0x4e   :  { %396 = vmatpush1.bf16.msra.mxu0 %v2666_v17 }
  0x4f   :  { %397 = vmatprep.subr.bf16.mxu0 %v2674_v19 }
  0x50   :  { %2061 = vmatpush3.bf16.msra.mxu1 %v2693_v24 }
  0x51   :  { %2062 = vmatprep.subr.bf16.mxu1 %v2556_v1 }
  0x52   :  { %398 = vmatpush1.bf16.msra.mxu0 %v2679_v20 }
  0x53   :  { %399 = vmatprep.subr.bf16.mxu0 %v2686_v22 }
  0x54   :  { %2063 = vmatpush3.bf16.msra.mxu1 %v2703_v27 }
  0x55   :  { %2064 = vmatprep.subr.bf16.mxu1 %v2556_v1 }
  0x56   :  { %400 = vmatpush1.bf16.msra.mxu0 %v2690_v23 }
  0x57   :  { %401 = vmatprep.subr.bf16.mxu0 %v2696_v25 }
  0x58   :  { %2065 = vmatpush3.bf16.msra.mxu1 %v2715_v31 }
  0x59   :  { %2066 = vmatprep.subr.bf16.mxu1 %v2556_v1 }
  0x5a   :  { %402 = vmatpush1.bf16.msra.mxu0 %v2700_v26 }
  0x5b   :  { %403 = vmatprep.subr.bf16.mxu0 %v2706_v28 }
  0x5c   :  { %2067 = vmatpush3.bf16.msra.mxu1 %v2723_v33 }
  0x5d   :  { %2068 = vmatprep.subr.bf16.mxu1 %v2556_v1 }
  0x5e   :  { %404 = vmatpush1.bf16.msra.mxu0 %v2710_v29 }
  0x5f   :  { %573 = vmatprep.subr.bf16.mxu0 %v2641_v6 }
  0x60   :  { %2069 = vmatpush3.bf16.msra.mxu1 %v2728_v34 }
  0x61   :  { %422 = vmatmul.mubr.bf16.vlgmr.msra.gmra.mrb[4].mxu0 %v260_v32  ;;  %2074 = vmatprep.subr.bf16.mxu1 %v2556_v1 }
  0x62   :  { %574 = vmatpush1.bf16.msra.mxu0 %v2643_v8  ;;  %605 = vmatprep.mubr.bf16.mxu0 %v2555_v0 }
  0x63   :  { %575 = vmatprep.subr.bf16.mxu0 %v2646_v9  ;;  %2071 = vmatmul.mubr.bf16.vlgmr.msra.gmra.mrb[4].mxu1 %v260_v32 }
  0x64   :  { %2075 = vmatpush3.bf16.msra.mxu1 %v2660_v15  ;;  %2090 = vmatprep.mubr.msk.bf16.mxu1 %vm2557_vm0, %v2556_v1 }
  0x65   :  { %2076 = vmatprep.subr.bf16.mxu1 %v2556_v1 }
  0x66   :  { %576 = vmatpush1.bf16.msra.mxu0 %v2649_v11 }
  0x67   :  { %577 = vmatprep.subr.bf16.mxu0 %v2652_v12 }
  0x68   :  { %2077 = vmatpush3.bf16.msra.mxu1 %v2671_v18 }
  0x69   :  { %2078 = vmatprep.subr.bf16.mxu1 %v2556_v1 }
  0x6a   :  { %578 = vmatpush1.bf16.msra.mxu0 %v2658_v14 }
  0x6b   :  { %579 = vmatprep.subr.bf16.mxu0 %v2663_v16 }
  0x6c   :  { %2079 = vmatpush3.bf16.msra.mxu1 %v2683_v21 }
  0x6d   :  { %2080 = vmatprep.subr.bf16.mxu1 %v2556_v1 }
  0x6e   :  { %580 = vmatpush1.bf16.msra.mxu0 %v2666_v17 }
  0x6f   :  { %581 = vmatprep.subr.bf16.mxu0 %v2674_v19 }
  0x70   :  { %2081 = vmatpush3.bf16.msra.mxu1 %v2693_v24 }
  0x71   :  { %2082 = vmatprep.subr.bf16.mxu1 %v2556_v1 }
  0x72   :  { %582 = vmatpush1.bf16.msra.mxu0 %v2679_v20 }
  0x73   :  { %583 = vmatprep.subr.bf16.mxu0 %v2686_v22 }
  0x74   :  { %2083 = vmatpush3.bf16.msra.mxu1 %v2703_v27 }
  0x75   :  { %2084 = vmatprep.subr.bf16.mxu1 %v2556_v1 }
  0x76   :  { %584 = vmatpush1.bf16.msra.mxu0 %v2690_v23 }
  0x77   :  { %585 = vmatprep.subr.bf16.mxu0 %v2696_v25 }
  0x78   :  { %2085 = vmatpush3.bf16.msra.mxu1 %v2715_v31 }
  0x79   :  { %2086 = vmatprep.subr.bf16.mxu1 %v2556_v1 }
  0x7a   :  { %586 = vmatpush1.bf16.msra.mxu0 %v2700_v26 }
  0x7b   :  { %587 = vmatprep.subr.bf16.mxu0 %v2706_v28 }
  0x7c   :  { %2087 = vmatpush3.bf16.msra.mxu1 %v2723_v33 }
  0x7d   :  { %2088 = vmatprep.subr.bf16.mxu1 %v2556_v1 }
  0x7e   :  { %588 = vmatpush1.bf16.msra.mxu0 %v2710_v29 }
  0x7f   :  { %757 = vmatprep.subr.bf16.mxu0 %v2641_v6 }
  0x80   :  { %2089 = vmatpush3.bf16.msra.mxu1 %v2728_v34 }
  0x81   :  { %2094 = vmatprep.subr.bf16.mxu1 %v2556_v1 }
 0x114   :  { %v170_v35 = vpop.f32.mrb[0].mxu0 }
 0x115   :  { %v172_v36 = vpop.f32.mrb[1].mxu0  ;;  %v2774_v48 = vadd.f32 %v170_v35, %v83_v47 }
 0x116   :  { %v174_v37 = vpop.f32.mrb[2].mxu0  ;;  %v213_v39 = vpop.f32.mrb[0].mxu1  ;;  %v2781_v3 = vadd.f32 %v172_v36, %v87_v61 }
 0x117   :  { %v176_v38 = vpop.f32.mrb[3].mxu0  ;;  %v2052_v40 = vpop.f32.mrb[1].mxu1  ;;  %v2776_v50 = vadd.f32 %v174_v37, %v83_v47 }
 0x118   :  { %v216_v41 = vpop.f32.mrb[2].mxu1  ;;  %v2783_v7 = vadd.f32 %v176_v38, %v87_v61 }
 0x119   :  { %v2053_v42 = vpop.f32.mrb[3].mxu1 }
 0x11a   :  { %v2790_v42 = vld [vmem:[%s3290_s4] ss:$0 sm:$0xff] }
 0x134   :  { %v423_v49 = vpop.f32.mrb[4].mxu0 }
 0x135   :  { %v471_v51 = vrot.slane %v423_v49, 1  ;;  %v474_v52 = vadd.f32 %v423_v49, %v2774_v48  ;;  %v425_v53 = vpop.f32.mrb[5].mxu0 }
 0x136   :  { %v427_v54 = vpop.f32.mrb[6].mxu0  ;;  %v464_v60 = vpop.f32.mrb[4].mxu1  ;;  %v489_v4 = vrot.slane %v425_v53, 1  ;;  %v492_v10 = vadd.f32 %v425_v53, %v2781_v3  ;;  %v2794_v53 = vadd.f32 %v213_v39, %v91_v45 }
 0x137   :  { %v475_v55 = vadd.f32 %v471_v51, %v2776_v50  ;;  %v1939_v56 = vmul.f32 -1.442695, %v474_v52  ;;  %v428_v57 = vpop.f32.mrb[7].mxu0  ;;  %v2072_v62 = vpop.f32.mrb[5].mxu1  ;;  %v506_v38 = vadd.f32 %v2790_v42, %v464_v60  ;;  %v2796_v54 = vadd.f32 %v216_v41, %v91_v45 }
 0x138   :  { %v467_v63 = vpop.f32.mrb[6].mxu1  ;;  %v493_v35 = vadd.f32 %v489_v4, %v2783_v7  ;;  %v1941_v40 = vmul.f32 -1.442695, %v492_v10 }
 0x139   :  { %2269 = vpow2.f32 %v1939_v56  ;;  %v1940_v59 = vmul.f32 -1.442695, %v475_v55  ;;  %v2073_v2 = vpop.f32.mrb[7].mxu1  ;;  %v508_v47 = vrot.slane %v506_v38, 1  ;;  %v2558_v63 = vmov 1983009808  }
 0x13a   :  { %v1942_v36 = vmul.f32 -1.442695, %v493_v35  ;;  %v535_v41 = vunpack.c.l.s4 %v2558_v63 }
 0x13b   :  { %2271 = vpow2.f32 %v1940_v59 }
 0x13c   :  { %v536_v10 = vunpack.c.0.s8 %v535_v41 }
 0x143   :  { %v2270_v5 = vpop.eup %2269 }
 0x144   :  { %v482_v13 = vadd.f32 1.0, %v2270_v5 }
 0x145   :  { %v2272_v32 = vpop.eup %2271 }
 0x146   :  { %v483_v37 = vadd.f32 1.0, %v2272_v32  ;;  %2273 = vrcp.f32 %v482_v13 }
 0x148   :  { %2275 = vrcp.f32 %v483_v37 }
 0x149   :  { %2277 = vpow2.f32 %v1941_v40 }
 0x14a   :  { %2279 = vpow2.f32 %v1942_v36  ;;  %v2805_v36 = vsub.s32 %v536_v10, %v2768_v44 }
 0x150   :  { %v2274_v49 = vpop.eup %2273 }
 0x151   :  { %v511_v51 = vmul.f32 %v2274_v49, %v506_v38 }
 0x152   :  { %v2276_v52 = vpop.eup %2275 }
 0x153   :  { %v512_v55 = vmul.f32 %v2276_v52, %v508_v47  ;;  %v2278_v56 = vpop.eup %2277  ;;  %v513_v57 = vadd.f32 %v511_v51, %v2794_v53 }
 0x154   :  { %v2280_v59 = vpop.eup %2279  ;;  %v500_v61 = vadd.f32 1.0, %v2278_v56 }
 0x155   :  { %v514_v58 = vadd.f32 %v512_v55, %v2796_v54  ;;  %v501_v60 = vadd.f32 1.0, %v2280_v59 }
 0x157   :  { %2281 = vtanh.f32 %v514_v58 }
 0x158   :  { %2283 = vtanh.f32 %v513_v57 }
 0x159   :  { %2285 = vrcp.f32 %v500_v61 }
 0x15a   :  { %2287 = vrcp.f32 %v501_v60 }
 0x161   :  { %v2282_v46 = vpop.eup %2281 }
 0x162   :  { %v519_v62 = vrot.slane %v2282_v46, 7  ;;  %v2284_v39 = vpop.eup %2283 }
 0x163   :  { %v2286_v5 = vpop.eup %2285 }
 0x164   :  { %v521_v2 = vsel %vm520_vm2, %v519_v62, %v2284_v39  ;;  %v2288_v35 = vpop.eup %2287 }
 0x165   :  { %v523_v4 = vsub.f32 %v2712_v30, %v521_v2 }
 0x167   :  { %v528_v13 = vmul.f32 %v2286_v5, %v523_v4  ;;  %v525_v32 = vrot.slane %v523_v4, 1 }
 0x169   :  { %v2802_v37 = vadd.f32 %v2284_v39, %v528_v13  ;;  %v529_v40 = vmul.f32 %v2288_v35, %v525_v32 }
 0x16b   :  { %v2807_v43 = vadd.f32 %v2282_v46, %v529_v40  ;;  %v563_v38 = vpack.c.bf16 %v2802_v37, %v2802_v37  ;;  %v540_v47 = vrot.slane %v2802_v37, %v2805_v36 }
 0x16d   :  { %v564_v45 = vpack.c.bf16 %v2807_v43, %v2807_v43  ;;  %v547_v30 = vrot.slane %v2807_v43, %v2805_v36  ;;  %v567_v44 = vunpack.c.l.b16 %v563_v38 }
 0x16f   :  { %v568_v49 = vunpack.c.l.b16 %v564_v45  ;;  %v552_v51 = vrot.slane %v547_v30, 7 }
 0x171   :  { %v569_v52 = vrot.slane %v568_v49, 7  ;;  %v553_v55 = vsel %vm520_vm2, %v552_v51, %v540_v47 }
 0x172   :  { %v555_v56 = vsel %vm554_vm3, %v552_v51, %v553_v55 }
 0x173   :  { %v570_v57 = vsel %vm520_vm2, %v569_v52, %v567_v44  ;;  %v557_v58 = vsel %vm556_vm4, %v552_v51, %v555_v56 }
 0x174   :  { %v571_v59 = vpack.c.b16 %v570_v57, %v570_v57  ;;  %v559_v61 = vsel %vm558_vm5, %v552_v51, %v557_v58 }
 0x175   :  { %562 = vst.msk [vmem:[#allocation9] sm:$0x3] %vm561_vm6, %v559_v61 }
 0x176   :  { %606 = vmatmul.mubr.bf16.vlgmr.msra.gmra.mrb[8].mxu0 %v571_v59  ;;  %2091 = vmatmul.mubr.bf16.vlgmr.msra.gmra.mrb[8].mxu1 %v571_v59 }
 0x177   :  { %758 = vmatpush1.bf16.msra.mxu0 %v2643_v8  ;;  %2095 = vmatpush3.bf16.msra.mxu1 %v2660_v15 }
 0x178   :  { %759 = vmatprep.subr.bf16.mxu0 %v2646_v9  ;;  %2096 = vmatprep.subr.bf16.mxu1 %v2556_v1 }
 0x179   :  { %789 = vmatprep.mubr.bf16.mxu0 %v2555_v0  ;;  %2110 = vmatprep.mubr.msk.bf16.mxu1 %vm2557_vm0, %v2556_v1 }
 0x17b   :  { %760 = vmatpush1.bf16.msra.mxu0 %v2649_v11  ;;  %2097 = vmatpush3.bf16.msra.mxu1 %v2671_v18 }
 0x17c   :  { %761 = vmatprep.subr.bf16.mxu0 %v2652_v12  ;;  %2098 = vmatprep.subr.bf16.mxu1 %v2556_v1 }
 0x17f   :  { %762 = vmatpush1.bf16.msra.mxu0 %v2658_v14  ;;  %2099 = vmatpush3.bf16.msra.mxu1 %v2683_v21 }
 0x180   :  { %763 = vmatprep.subr.bf16.mxu0 %v2663_v16  ;;  %2100 = vmatprep.subr.bf16.mxu1 %v2556_v1 }
 0x183   :  { %764 = vmatpush1.bf16.msra.mxu0 %v2666_v17  ;;  %2101 = vmatpush3.bf16.msra.mxu1 %v2693_v24 }
 0x184   :  { %765 = vmatprep.subr.bf16.mxu0 %v2674_v19  ;;  %2102 = vmatprep.subr.bf16.mxu1 %v2556_v1 }
 0x187   :  { %766 = vmatpush1.bf16.msra.mxu0 %v2679_v20  ;;  %2103 = vmatpush3.bf16.msra.mxu1 %v2703_v27 }
 0x188   :  { %767 = vmatprep.subr.bf16.mxu0 %v2686_v22  ;;  %2104 = vmatprep.subr.bf16.mxu1 %v2556_v1 }
 0x18b   :  { %768 = vmatpush1.bf16.msra.mxu0 %v2690_v23  ;;  %2105 = vmatpush3.bf16.msra.mxu1 %v2715_v31 }
 0x18c   :  { %769 = vmatprep.subr.bf16.mxu0 %v2696_v25  ;;  %2106 = vmatprep.subr.bf16.mxu1 %v2556_v1 }
 0x18f   :  { %770 = vmatpush1.bf16.msra.mxu0 %v2700_v26  ;;  %2107 = vmatpush3.bf16.msra.mxu1 %v2723_v33 }
 0x190   :  { %771 = vmatprep.subr.bf16.mxu0 %v2706_v28  ;;  %2108 = vmatprep.subr.bf16.mxu1 %v2556_v1 }
 0x193   :  { %772 = vmatpush1.bf16.msra.mxu0 %v2710_v29  ;;  %2109 = vmatpush3.bf16.msra.mxu1 %v2728_v34 }
 0x194   :  { %947 = vmatprep.subr.bf16.mxu0 %v2641_v6  ;;  %2114 = vmatprep.subr.bf16.mxu1 %v2556_v1 }
 0x249   :  { %v607_v60 = vpop.f32.mrb[8].mxu0  ;;  %v648_v46 = vpop.f32.mrb[8].mxu1 }
 0x24a   :  { %v655_v62 = vrot.slane %v607_v60, 7  ;;  %v659_v39 = vadd.f32 %v607_v60, %v2776_v50  ;;  %v609_v63 = vpop.f32.mrb[9].mxu0  ;;  %v2092_v41 = vpop.f32.mrb[9].mxu1  ;;  %v690_v55 = vadd.f32 %v2790_v42, %v648_v46 }
 0x24b   :  { %v611_v2 = vpop.f32.mrb[10].mxu0  ;;  %v651_v4 = vpop.f32.mrb[10].mxu1  ;;  %v673_v40 = vrot.slane %v609_v63, 7  ;;  %v677_v38 = vadd.f32 %v609_v63, %v2783_v7 }
 0x24c   :  { %v658_v5 = vadd.f32 %v655_v62, %v2774_v48  ;;  %v1944_v10 = vmul.f32 -1.442695, %v659_v39  ;;  %v612_v13 = vpop.f32.mrb[11].mxu0  ;;  %v2093_v32 = vpop.f32.mrb[11].mxu1  ;;  %v692_v57 = vrot.slane %v690_v55, 7 }
 0x24d   :  { %v676_v47 = vadd.f32 %v673_v40, %v2781_v3  ;;  %v1946_v44 = vmul.f32 -1.442695, %v677_v38 }
 0x24e   :  { %v1943_v35 = vmul.f32 -1.442695, %v658_v5  ;;  %2289 = vpow2.f32 %v1944_v10 }
 0x24f   :  { %v1945_v52 = vmul.f32 -1.442695, %v676_v47 }
 0x250   :  { %2291 = vpow2.f32 %v1943_v35 }
 0x258   :  { %v2290_v45 = vpop.eup %2289 }
 0x259   :  { %v667_v30 = vadd.f32 1.0, %v2290_v45 }
 0x25a   :  { %v2292_v49 = vpop.eup %2291 }
 0x25b   :  { %v666_v51 = vadd.f32 1.0, %v2292_v49  ;;  %2293 = vrcp.f32 %v667_v30 }
 0x25d   :  { %2295 = vrcp.f32 %v666_v51 }
 0x25e   :  { %2297 = vpow2.f32 %v1946_v44 }
 0x25f   :  { %2299 = vpow2.f32 %v1945_v52 }
 0x265   :  { %v2294_v56 = vpop.eup %2293 }
 0x266   :  { %v696_v58 = vmul.f32 %v2294_v56, %v690_v55 }
 0x267   :  { %v2296_v59 = vpop.eup %2295 }
 0x268   :  { %v695_v61 = vmul.f32 %v2296_v59, %v692_v57  ;;  %v698_v60 = vadd.f32 %v696_v58, %v2796_v54  ;;  %v2298_v62 = vpop.eup %2297 }
 0x269   :  { %v2300_v63 = vpop.eup %2299  ;;  %v685_v41 = vadd.f32 1.0, %v2298_v62 }
 0x26a   :  { %v697_v39 = vadd.f32 %v695_v61, %v2794_v53  ;;  %2301 = vtanh.f32 %v698_v60  ;;  %v684_v2 = vadd.f32 1.0, %v2300_v63 }
 0x26c   :  { %2303 = vtanh.f32 %v697_v39 }
 0x26d   :  { %2305 = vrcp.f32 %v685_v41 }
 0x26e   :  { %2307 = vrcp.f32 %v684_v2 }
 0x274   :  { %v2302_v4 = vpop.eup %2301 }
 0x275   :  { %v704_v5 = vrot.slane %v2302_v4, 1 }
 0x276   :  { %v2304_v46 = vpop.eup %2303 }
 0x277   :  { %v703_v10 = vrot.slane %v2304_v46, 1  ;;  %v708_v13 = vsub.f32 %v2807_v43, %v704_v5  ;;  %v2306_v40 = vpop.eup %2305 }
 0x278   :  { %v2308_v30 = vpop.eup %2307 }
 0x279   :  { %v707_v32 = vsub.f32 %v2802_v37, %v703_v10  ;;  %v712_v35 = vrot.slane %v708_v13, 7 }
 0x27b   :  { %v711_v38 = vrot.slane %v707_v32, 7  ;;  %v716_v45 = vmul.f32 %v2306_v40, %v712_v35 }
 0x27d   :  { %v715_v47 = vmul.f32 %v2308_v30, %v711_v38  ;;  %v2867_v49 = vadd.f32 %v2302_v4, %v716_v45 }
 0x27f   :  { %v2869_v51 = vadd.f32 %v2304_v46, %v715_v47  ;;  %v748_v43 = vpack.c.bf16 %v2867_v49, %v2867_v49  ;;  %v734_v37 = vrot.slane %v2867_v49, %v2805_v36 }
 0x281   :  { %v727_v44 = vrot.slane %v2869_v51, %v2805_v36  ;;  %v747_v52 = vpack.c.bf16 %v2869_v51, %v2869_v51  ;;  %v752_v58 = vunpack.c.l.b16 %v748_v43 }
 0x283   :  { %v735_v55 = vrot.slane %v727_v44, 1  ;;  %v751_v56 = vunpack.c.l.b16 %v747_v52 }
 0x285   :  { %v738_v57 = vsel %vm520_vm2, %v734_v37, %v735_v55  ;;  %v753_v59 = vrot.slane %v751_v56, 1 }
 0x286   :  { %v739_v61 = vsel %vm554_vm3, %v734_v37, %v738_v57 }
 0x287   :  { %v740_v60 = vsel %vm556_vm4, %v734_v37, %v739_v61  ;;  %v754_v62 = vsel %vm520_vm2, %v752_v58, %v753_v59 }
 0x288   :  { %v741_v39 = vsel %vm558_vm5, %v734_v37, %v740_v60  ;;  %v755_v63 = vpack.c.b16 %v754_v62, %v754_v62 }
 0x289   :  { %742 = vrot.lane.b32.xlu0 %v741_v39, %s2559_s8 }
 0x28a   :  { %790 = vmatmul.mubr.bf16.vlgmr.msra.gmra.mrb[12].mxu0 %v755_v63  ;;  %2111 = vmatmul.mubr.bf16.vlgmr.msra.gmra.mrb[12].mxu1 %v755_v63 }
 0x28b   :  { %948 = vmatpush1.bf16.msra.mxu0 %v2643_v8  ;;  %2115 = vmatpush3.bf16.msra.mxu1 %v2660_v15 }
 0x28c   :  { %949 = vmatprep.subr.bf16.mxu0 %v2646_v9  ;;  %2116 = vmatprep.subr.bf16.mxu1 %v2556_v1 }
 0x28d   :  { %979 = vmatprep.mubr.bf16.mxu0 %v2555_v0  ;;  %2130 = vmatprep.mubr.msk.bf16.mxu1 %vm2557_vm0, %v2556_v1 }
 0x28f   :  { %950 = vmatpush1.bf16.msra.mxu0 %v2649_v11  ;;  %2117 = vmatpush3.bf16.msra.mxu1 %v2671_v18 }
 0x290   :  { %951 = vmatprep.subr.bf16.mxu0 %v2652_v12  ;;  %2118 = vmatprep.subr.bf16.mxu1 %v2556_v1 }
 0x293   :  { %952 = vmatpush1.bf16.msra.mxu0 %v2658_v14  ;;  %2119 = vmatpush3.bf16.msra.mxu1 %v2683_v21 }
 0x294   :  { %953 = vmatprep.subr.bf16.mxu0 %v2663_v16  ;;  %2120 = vmatprep.subr.bf16.mxu1 %v2556_v1 }
 0x297   :  { %954 = vmatpush1.bf16.msra.mxu0 %v2666_v17  ;;  %2121 = vmatpush3.bf16.msra.mxu1 %v2693_v24 }
 0x298   :  { %955 = vmatprep.subr.bf16.mxu0 %v2674_v19  ;;  %2122 = vmatprep.subr.bf16.mxu1 %v2556_v1 }
 0x29b   :  { %956 = vmatpush1.bf16.msra.mxu0 %v2679_v20  ;;  %2123 = vmatpush3.bf16.msra.mxu1 %v2703_v27 }
 0x29c   :  { %957 = vmatprep.subr.bf16.mxu0 %v2686_v22  ;;  %2124 = vmatprep.subr.bf16.mxu1 %v2556_v1 }
 0x29f   :  { %958 = vmatpush1.bf16.msra.mxu0 %v2690_v23  ;;  %2125 = vmatpush3.bf16.msra.mxu1 %v2715_v31 }
 0x2a0   :  { %959 = vmatprep.subr.bf16.mxu0 %v2696_v25  ;;  %2126 = vmatprep.subr.bf16.mxu1 %v2556_v1 }
 0x2a3   :  { %960 = vmatpush1.bf16.msra.mxu0 %v2700_v26  ;;  %2127 = vmatpush3.bf16.msra.mxu1 %v2723_v33 }
 0x2a4   :  { %961 = vmatprep.subr.bf16.mxu0 %v2706_v28  ;;  %2128 = vmatprep.subr.bf16.mxu1 %v2556_v1 }
 0x2a7   :  { %962 = vmatpush1.bf16.msra.mxu0 %v2710_v29  ;;  %2129 = vmatpush3.bf16.msra.mxu1 %v2728_v34 }
 0x2a8   :  { %1137 = vmatprep.subr.bf16.mxu0 %v2641_v6  ;;  %2134 = vmatprep.subr.bf16.mxu1 %v2556_v1 }
 0x2fb   :  { %v743_v41 = vpop.permute.xlu0 %742 }
 0x2fc   :  { %746 = vst.msk [vmem:[#allocation9] sm:$0x3] %vm745_vm7, %v743_v41 }
 0x35d   :  { %v791_v2 = vpop.f32.mrb[12].mxu0  ;;  %v832_v4 = vpop.f32.mrb[12].mxu1 }
 0x35e   :  { %v839_v5 = vrot.slane %v791_v2, 6  ;;  %v840_v46 = vrot.slane %v791_v2, 7  ;;  %v793_v10 = vpop.f32.mrb[13].mxu0  ;;  %v2112_v13 = vpop.f32.mrb[13].mxu1  ;;  %v876_v62 = vadd.f32 %v2790_v42, %v832_v4 }
 0x35f   :  { %v795_v32 = vpop.f32.mrb[14].mxu0  ;;  %v835_v35 = vpop.f32.mrb[14].mxu1  ;;  %v858_v52 = vrot.slane %v793_v10, 6  ;;  %v859_v43 = vrot.slane %v793_v10, 7 }
 0x360   :  { %v843_v40 = vadd.f32 %v839_v5, %v2774_v48  ;;  %v844_v38 = vadd.f32 %v840_v46, %v2776_v50  ;;  %v796_v45 = vpop.f32.mrb[15].mxu0  ;;  %v2113_v30 = vpop.f32.mrb[15].mxu1  ;;  %v878_v39 = vrot.slane %v876_v62, 6  ;;  %v879_v41 = vrot.slane %v876_v62, 7 }
 0x361   :  { %v862_v37 = vadd.f32 %v858_v52, %v2781_v3  ;;  %v863_v56 = vadd.f32 %v859_v43, %v2783_v7 }
 0x362   :  { %v1947_v47 = vmul.f32 -1.442695, %v843_v40  ;;  %v1948_v44 = vmul.f32 -1.442695, %v844_v38 }
 0x363   :  { %v1949_v61 = vmul.f32 -1.442695, %v862_v37  ;;  %v1950_v60 = vmul.f32 -1.442695, %v863_v56 }
 0x364   :  { %2309 = vpow2.f32 %v1947_v47 }
 0x365   :  { %2311 = vpow2.f32 %v1948_v44 }
 0x36e   :  { %v2310_v55 = vpop.eup %2309 }
 0x36f   :  { %v2312_v57 = vpop.eup %2311  ;;  %v851_v58 = vadd.f32 1.0, %v2310_v55 }
 0x370   :  { %v852_v59 = vadd.f32 1.0, %v2312_v57 }
 0x371   :  { %2313 = vrcp.f32 %v851_v58 }
 0x372   :  { %2315 = vrcp.f32 %v852_v59 }
 0x373   :  { %2317 = vpow2.f32 %v1949_v61 }
 0x374   :  { %2319 = vpow2.f32 %v1950_v60 }
 0x37b   :  { %v2314_v63 = vpop.eup %2313 }
 0x37c   :  { %v2316_v2 = vpop.eup %2315  ;;  %v882_v5 = vmul.f32 %v2314_v63, %v878_v39 }
 0x37d   :  { %v883_v46 = vmul.f32 %v2316_v2, %v879_v41  ;;  %v2318_v13 = vpop.eup %2317 }
 0x37e   :  { %v884_v10 = vadd.f32 %v882_v5, %v2794_v53  ;;  %v2320_v35 = vpop.eup %2319  ;;  %v870_v40 = vadd.f32 1.0, %v2318_v13 }
 0x37f   :  { %v885_v32 = vadd.f32 %v883_v46, %v2796_v54  ;;  %v871_v38 = vadd.f32 1.0, %v2320_v35 }
 0x380   :  { %2321 = vtanh.f32 %v884_v10 }
 0x381   :  { %2323 = vtanh.f32 %v885_v32 }
 0x382   :  { %2325 = vrcp.f32 %v870_v40 }
 0x383   :  { %2327 = vrcp.f32 %v871_v38 }
 0x38a   :  { %v2322_v4 = vpop.eup %2321 }
 0x38b   :  { %v2324_v45 = vpop.eup %2323  ;;  %v890_v30 = vrot.slane %v2322_v4, 1 }
 0x38c   :  { %v891_v47 = vrot.slane %v2324_v45, 1  ;;  %v2326_v37 = vpop.eup %2325 }
 0x38d   :  { %v894_v44 = vsub.f32 %v2869_v51, %v890_v30  ;;  %v2328_v56 = vpop.eup %2327 }
 0x38e   :  { %v895_v52 = vsub.f32 %v2867_v49, %v891_v47 }
 0x38f   :  { %v898_v43 = vrot.slane %v894_v44, 7 }
 0x390   :  { %v899_v55 = vrot.slane %v895_v52, 7 }
 0x391   :  { %v902_v57 = vmul.f32 %v2326_v37, %v898_v43 }
 0x392   :  { %v903_v58 = vmul.f32 %v2328_v56, %v899_v55 }
 0x393   :  { %v2930_v59 = vadd.f32 %v2322_v4, %v902_v57 }
 0x394   :  { %v2932_v61 = vadd.f32 %v2324_v45, %v903_v58 }
 0x395   :  { %v936_v60 = vpack.c.bf16 %v2930_v59, %v2930_v59  ;;  %v914_v51 = vrot.slane %v2930_v59, %v2805_v36 }
 0x396   :  { %v937_v62 = vpack.c.bf16 %v2932_v61, %v2932_v61  ;;  %v922_v49 = vrot.slane %v2932_v61, %v2805_v36 }
 0x397   :  { %v940_v39 = vunpack.c.l.b16 %v936_v60  ;;  %v915_v46 = vcombine.high %v914_v51, %v914_v51 }
 0x398   :  { %v941_v63 = vunpack.c.l.b16 %v937_v62  ;;  %v923_v41 = vcombine.high %v922_v49, %v922_v49 }
 0x399   :  { %v942_v2 = vrot.slane %v940_v39, 2 }
 0x39a   :  { %v943_v5 = vrot.slane %v941_v63, 1  ;;  %v926_v10 = vrot.slane %v923_v41, 7 }
 0x39c   :  { %v944_v13 = vsel %vm520_vm2, %v943_v5, %v942_v2  ;;  %v927_v32 = vsel %vm520_vm2, %v926_v10, %v915_v46 }
 0x39d   :  { %v945_v35 = vpack.c.b16 %v944_v13, %v944_v13  ;;  %v928_v40 = vsel %vm554_vm3, %v926_v10, %v927_v32 }
 0x39e   :  { %v929_v38 = vsel %vm556_vm4, %v926_v10, %v928_v40 }
 0x39f   :  { %980 = vmatmul.mubr.bf16.vlgmr.msra.gmra.mrb[16].mxu0 %v945_v35  ;;  %2131 = vmatmul.mubr.bf16.vlgmr.msra.gmra.mrb[16].mxu1 %v945_v35  ;;  %v930_v4 = vsel %vm558_vm5, %v926_v10, %v929_v38 }
 0x3a0   :  { %931 = vrot.lane.b32.xlu1 %v930_v4, %s2552_s1  ;;  %1138 = vmatpush1.bf16.msra.mxu0 %v2643_v8 }
 0x3a1   :  { %2135 = vmatpush3.bf16.msra.mxu1 %v2660_v15  ;;  %1139 = vmatprep.subr.bf16.mxu0 %v2646_v9 }
 0x3a2   :  { %2136 = vmatprep.subr.bf16.mxu1 %v2556_v1  ;;  %1169 = vmatprep.mubr.bf16.mxu0 %v2555_v0 }
 0x3a3   :  { %2150 = vmatprep.mubr.msk.bf16.mxu1 %vm2557_vm0, %v2556_v1 }
 0x3a4   :  { %1140 = vmatpush1.bf16.msra.mxu0 %v2649_v11 }
 0x3a5   :  { %2137 = vmatpush3.bf16.msra.mxu1 %v2671_v18  ;;  %1141 = vmatprep.subr.bf16.mxu0 %v2652_v12 }
 0x3a6   :  { %2138 = vmatprep.subr.bf16.mxu1 %v2556_v1 }
 0x3a8   :  { %1142 = vmatpush1.bf16.msra.mxu0 %v2658_v14 }
 0x3a9   :  { %2139 = vmatpush3.bf16.msra.mxu1 %v2683_v21  ;;  %1143 = vmatprep.subr.bf16.mxu0 %v2663_v16 }
 0x3aa   :  { %2140 = vmatprep.subr.bf16.mxu1 %v2556_v1 }
 0x3ac   :  { %1144 = vmatpush1.bf16.msra.mxu0 %v2666_v17 }
 0x3ad   :  { %2141 = vmatpush3.bf16.msra.mxu1 %v2693_v24  ;;  %1145 = vmatprep.subr.bf16.mxu0 %v2674_v19 }
 0x3ae   :  { %2142 = vmatprep.subr.bf16.mxu1 %v2556_v1 }
 0x3b0   :  { %1146 = vmatpush1.bf16.msra.mxu0 %v2679_v20 }
 0x3b1   :  { %2143 = vmatpush3.bf16.msra.mxu1 %v2703_v27  ;;  %1147 = vmatprep.subr.bf16.mxu0 %v2686_v22 }
 0x3b2   :  { %2144 = vmatprep.subr.bf16.mxu1 %v2556_v1 }
 0x3b4   :  { %1148 = vmatpush1.bf16.msra.mxu0 %v2690_v23 }
 0x3b5   :  { %2145 = vmatpush3.bf16.msra.mxu1 %v2715_v31  ;;  %1149 = vmatprep.subr.bf16.mxu0 %v2696_v25 }
 0x3b6   :  { %2146 = vmatprep.subr.bf16.mxu1 %v2556_v1 }
 0x3b8   :  { %1150 = vmatpush1.bf16.msra.mxu0 %v2700_v26 }
 0x3b9   :  { %2147 = vmatpush3.bf16.msra.mxu1 %v2723_v33  ;;  %1151 = vmatprep.subr.bf16.mxu0 %v2706_v28 }
 0x3ba   :  { %2148 = vmatprep.subr.bf16.mxu1 %v2556_v1 }
 0x3bc   :  { %1152 = vmatpush1.bf16.msra.mxu0 %v2710_v29 }
 0x3bd   :  { %2149 = vmatpush3.bf16.msra.mxu1 %v2728_v34  ;;  %1324 = vmatprep.subr.bf16.mxu0 %v2641_v6 }
 0x3be   :  { %2154 = vmatprep.subr.bf16.mxu1 %v2556_v1 }
 0x412   :  { %v932_v8 = vpop.permute.xlu1 %931 }
 0x413   :  { %935 = vst.msk [vmem:[#allocation9] sm:$0x3] %vm934_vm8, %v932_v8 }
 0x472   :  { %v981_v9 = vpop.f32.mrb[16].mxu0  ;;  %v1022_v11 = vpop.f32.mrb[16].mxu1 }
 0x473   :  { %v1029_v12 = vrot.slane %v981_v9, 5  ;;  %v1030_v14 = vrot.slane %v981_v9, 6  ;;  %v983_v15 = vpop.f32.mrb[17].mxu0  ;;  %v2132_v16 = vpop.f32.mrb[17].mxu1  ;;  %v1066_v30 = vadd.f32 %v2790_v42, %v1022_v11 }
 0x474   :  { %v985_v17 = vpop.f32.mrb[18].mxu0  ;;  %v1025_v18 = vpop.f32.mrb[18].mxu1  ;;  %v1048_v24 = vrot.slane %v983_v15, 5  ;;  %v1049_v25 = vrot.slane %v983_v15, 6  ;;  %v3002_v16 = vld [vmem:[#allocation8] ss:$12 sps:$4 sm:$0xff]  }
 0x475   :  { %v1033_v19 = vadd.f32 %v1029_v12, %v2774_v48  ;;  %v1034_v20 = vadd.f32 %v1030_v14, %v2776_v50  ;;  %v986_v21 = vpop.f32.mrb[19].mxu0  ;;  %v2133_v6 = vpop.f32.mrb[19].mxu1  ;;  %v1068_v47 = vrot.slane %v1066_v30, 5  ;;  %v1069_v52 = vrot.slane %v1066_v30, 6  ;;  %v3005_v17 = vld [vmem:[#allocation8 + $0x8] ss:$12 sps:$4 sm:$0xff]  }
 0x476   :  { %v1052_v26 = vadd.f32 %v1048_v24, %v2781_v3  ;;  %v1053_v28 = vadd.f32 %v1049_v25, %v2783_v7  ;;  %v3008_v18 = vld [vmem:[#allocation8 + $0x1c] ss:$12 sps:$4 sm:$0xff]   ;;  %v3021_v21 = vld [vmem:[#allocation8 + $0x34] ss:$12 sps:$4 sm:$0xff]   ;;  %v3068_v30 = vld [vmem:[#allocation8 + $0x98] ss:$12 sps:$4 sm:$0xff]  }
 0x477   :  { %v1951_v22 = vmul.f32 -1.442695, %v1033_v19  ;;  %v1952_v23 = vmul.f32 -1.442695, %v1034_v20  ;;  %v3015_v19 = vld [vmem:[#allocation8 + $0x18] ss:$12 sps:$4 sm:$0xff]  }
 0x478   :  { %v1953_v34 = vmul.f32 -1.442695, %v1052_v26  ;;  %v1954_v45 = vmul.f32 -1.442695, %v1053_v28  ;;  %v3018_v20 = vld [vmem:[#allocation8 + $0x20] ss:$12 sps:$4 sm:$0xff]  }
 0x479   :  { %2329 = vpow2.f32 %v1951_v22  ;;  %v3025_v6 = vld [vmem:[#allocation8 + $0x30] ss:$12 sps:$4 sm:$0xff]   ;;  %v3028_v22 = vld [vmem:[#allocation8 + $0x38] ss:$12 sps:$4 sm:$0xff]   ;;  %v3035_v24 = vld [vmem:[#allocation8 + $0x48] ss:$12 sps:$4 sm:$0xff]  }
 0x47a   :  { %2331 = vpow2.f32 %v1952_v23  ;;  %v3031_v23 = vld [vmem:[#allocation8 + $0x4c] ss:$12 sps:$4 sm:$0xff]   ;;  %v3038_v25 = vld [vmem:[#allocation8 + $0x50] ss:$12 sps:$4 sm:$0xff]   ;;  %v3048_v28 = vld [vmem:[#allocation8 + $0x68] ss:$12 sps:$4 sm:$0xff]  }
 0x47b   :  { %v3041_v26 = vld [vmem:[#allocation8 + $0x64] ss:$12 sps:$4 sm:$0xff]  }
 0x483   :  { %v2330_v27 = vpop.eup %2329 }
 0x484   :  { %v2332_v29 = vpop.eup %2331  ;;  %v1041_v31 = vadd.f32 1.0, %v2330_v27  ;;  %v3045_v27 = vld [vmem:[#allocation8 + $0x60] ss:$12 sps:$4 sm:$0xff]  }
 0x485   :  { %v1042_v33 = vadd.f32 1.0, %v2332_v29  ;;  %v3051_v29 = vld [vmem:[#allocation8 + $0x7c] ss:$12 sps:$4 sm:$0xff]  }
 0x486   :  { %2333 = vrcp.f32 %v1041_v31  ;;  %v3055_v31 = vld [vmem:[#allocation8 + $0x78] ss:$12 sps:$4 sm:$0xff]  }
 0x487   :  { %2335 = vrcp.f32 %v1042_v33  ;;  %v3058_v33 = vld [vmem:[#allocation8 + $0x80] ss:$12 sps:$4 sm:$0xff]  }
 0x488   :  { %2337 = vpow2.f32 %v1953_v34  ;;  %v3061_v34 = vld [vmem:[#allocation8 + $0x94] ss:$12 sps:$4 sm:$0xff]  }
 0x489   :  { %2339 = vpow2.f32 %v1954_v45  ;;  %v3065_v45 = vld [vmem:[#allocation8 + $0x90] ss:$12 sps:$4 sm:$0xff]  }
 0x490   :  { %v2334_v44 = vpop.eup %2333 }
 0x491   :  { %v2336_v43 = vpop.eup %2335  ;;  %v1072_v37 = vmul.f32 %v2334_v44, %v1068_v47  ;;  %v3071_v47 = vld [vmem:[#allocation8 + $0xac] ss:$12 sps:$4 sm:$0xff]   ;;  %v3075_v44 = vld [vmem:[#allocation8 + $0xa8] ss:$12 sps:$4 sm:$0xff]  }
 0x492   :  { %v1073_v55 = vmul.f32 %v2336_v43, %v1069_v52  ;;  %v2338_v57 = vpop.eup %2337  ;;  %v3078_v52 = vld [vmem:[#allocation8 + $0xb0] ss:$12 sps:$4 sm:$0xff]  }
 0x493   :  { %v1074_v56 = vadd.f32 %v1072_v37, %v2794_v53  ;;  %v2340_v60 = vpop.eup %2339  ;;  %v1060_v62 = vadd.f32 1.0, %v2338_v57  ;;  %v3081_v43 = vld [vmem:[#allocation8 + $0x4] ss:$12 sps:$4 sm:$0xff]  }
 0x494   :  { %v1075_v58 = vadd.f32 %v1073_v55, %v2796_v54  ;;  %v1061_v51 = vadd.f32 1.0, %v2340_v60 }
 0x495   :  { %2341 = vtanh.f32 %v1074_v56 }
 0x496   :  { %2343 = vtanh.f32 %v1075_v58 }
 0x497   :  { %2345 = vrcp.f32 %v1060_v62 }
 0x498   :  { %2347 = vrcp.f32 %v1061_v51 }
 0x49f   :  { %v2342_v49 = vpop.eup %2341 }
 0x4a0   :  { %v2344_v39 = vpop.eup %2343  ;;  %v1080_v63 = vrot.slane %v2342_v49, 1 }
 0x4a1   :  { %v1081_v41 = vrot.slane %v2344_v39, 1  ;;  %v2346_v10 = vpop.eup %2345 }
 0x4a2   :  { %v1084_v2 = vsub.f32 %v2930_v59, %v1080_v63  ;;  %v2348_v32 = vpop.eup %2347 }
 0x4a3   :  { %v1085_v5 = vsub.f32 %v2932_v61, %v1081_v41 }
 0x4a4   :  { %v1088_v46 = vrot.slane %v1084_v2, 7 }
 0x4a5   :  { %v1089_v13 = vrot.slane %v1085_v5, 7 }
 0x4a6   :  { %v1092_v35 = vmul.f32 %v2346_v10, %v1088_v46 }
 0x4a7   :  { %v1093_v40 = vmul.f32 %v2348_v32, %v1089_v13 }
 0x4a8   :  { %v2993_v38 = vadd.f32 %v2342_v49, %v1092_v35 }
 0x4a9   :  { %v2995_v4 = vadd.f32 %v2344_v39, %v1093_v40 }
 0x4aa   :  { %v1126_v8 = vpack.c.bf16 %v2993_v38, %v2993_v38 }
 0x4ab   :  { %v1127_v9 = vpack.c.bf16 %v2995_v4, %v2995_v4 }
 0x4ac   :  { %v1130_v11 = vunpack.c.l.b16 %v1126_v8 }
 0x4ad   :  { %v1131_v59 = vunpack.c.l.b16 %v1127_v9 }
 0x4ae   :  { %v1132_v12 = vrot.slane %v1130_v11, 3 }
 0x4af   :  { %v1133_v61 = vrot.slane %v1131_v59, 2 }
 0x4b1   :  { %v1134_v14 = vsel %vm520_vm2, %v1133_v61, %v1132_v12 }
 0x4b2   :  { %v1135_v15 = vpack.c.b16 %v1134_v14, %v1134_v14 }
 0x4b4   :  { %1170 = vmatmul.mubr.bf16.vlgmr.msra.gmra.mrb[20].mxu0 %v1135_v15  ;;  %2151 = vmatmul.mubr.bf16.vlgmr.msra.gmra.mrb[20].mxu1 %v1135_v15 }
 0x4b5   :  { %1325 = vmatpush1.bf16.msra.mxu0 %v3002_v16  ;;  %2155 = vmatpush3.bf16.msra.mxu1 %v3005_v17 }
 0x4b6   :  { %1326 = vmatprep.subr.bf16.mxu0 %v3008_v18  ;;  %2156 = vmatprep.subr.bf16.mxu1 %v2556_v1 }
 0x4b7   :  { %1356 = vmatprep.mubr.bf16.mxu0 %v2555_v0  ;;  %2170 = vmatprep.mubr.msk.bf16.mxu1 %vm2557_vm0, %v2556_v1 }
 0x4b9   :  { %1327 = vmatpush1.bf16.msra.mxu0 %v3015_v19  ;;  %2157 = vmatpush3.bf16.msra.mxu1 %v3018_v20 }
 0x4ba   :  { %1328 = vmatprep.subr.bf16.mxu0 %v3021_v21  ;;  %2158 = vmatprep.subr.bf16.mxu1 %v2556_v1 }
 0x4bd   :  { %1329 = vmatpush1.bf16.msra.mxu0 %v3025_v6  ;;  %2159 = vmatpush3.bf16.msra.mxu1 %v3028_v22 }
 0x4be   :  { %1330 = vmatprep.subr.bf16.mxu0 %v3031_v23  ;;  %2160 = vmatprep.subr.bf16.mxu1 %v2556_v1 }
 0x4c1   :  { %1331 = vmatpush1.bf16.msra.mxu0 %v3035_v24  ;;  %2161 = vmatpush3.bf16.msra.mxu1 %v3038_v25 }
 0x4c2   :  { %1332 = vmatprep.subr.bf16.mxu0 %v3041_v26  ;;  %2162 = vmatprep.subr.bf16.mxu1 %v2556_v1 }
 0x4c5   :  { %1333 = vmatpush1.bf16.msra.mxu0 %v3045_v27  ;;  %2163 = vmatpush3.bf16.msra.mxu1 %v3048_v28 }
 0x4c6   :  { %1334 = vmatprep.subr.bf16.mxu0 %v3051_v29  ;;  %2164 = vmatprep.subr.bf16.mxu1 %v2556_v1 }
 0x4c9   :  { %1335 = vmatpush1.bf16.msra.mxu0 %v3055_v31  ;;  %2165 = vmatpush3.bf16.msra.mxu1 %v3058_v33 }
 0x4ca   :  { %1336 = vmatprep.subr.bf16.mxu0 %v3061_v34  ;;  %2166 = vmatprep.subr.bf16.mxu1 %v2556_v1 }
 0x4cd   :  { %1337 = vmatpush1.bf16.msra.mxu0 %v3065_v45  ;;  %2167 = vmatpush3.bf16.msra.mxu1 %v3068_v30 }
 0x4ce   :  { %1338 = vmatprep.subr.bf16.mxu0 %v3071_v47  ;;  %2168 = vmatprep.subr.bf16.mxu1 %v2556_v1 }
 0x4d1   :  { %1339 = vmatpush1.bf16.msra.mxu0 %v3075_v44  ;;  %2169 = vmatpush3.bf16.msra.mxu1 %v3078_v52 }
 0x4d2   :  { %1513 = vmatprep.subr.bf16.mxu0 %v3081_v43  ;;  %2174 = vmatprep.subr.bf16.mxu1 %v2556_v1 }
 0x587   :  { %v1171_v37 = vpop.f32.mrb[20].mxu0  ;;  %v1212_v55 = vpop.f32.mrb[20].mxu1 }
 0x588   :  { %v1219_v56 = vrot.slane %v1171_v37, 4  ;;  %v1220_v57 = vrot.slane %v1171_v37, 5  ;;  %v1173_v58 = vpop.f32.mrb[21].mxu0  ;;  %v2152_v60 = vpop.f32.mrb[21].mxu1  ;;  %v1256_v12 = vadd.f32 %v2790_v42, %v1212_v55 }
 0x589   :  { %v1175_v62 = vpop.f32.mrb[22].mxu0  ;;  %v1215_v51 = vpop.f32.mrb[22].mxu1  ;;  %v1238_v46 = vrot.slane %v1173_v58, 4  ;;  %v1239_v10 = vrot.slane %v1173_v58, 5 }
 0x58a   :  { %v1223_v49 = vadd.f32 %v1219_v56, %v2774_v48  ;;  %v1224_v39 = vadd.f32 %v1220_v57, %v2776_v50  ;;  %v1176_v63 = vpop.f32.mrb[23].mxu0  ;;  %v2153_v41 = vpop.f32.mrb[23].mxu1  ;;  %v1258_v61 = vrot.slane %v1256_v12, 4  ;;  %v1259_v15 = vrot.slane %v1256_v12, 5 }
 0x58b   :  { %v1242_v13 = vadd.f32 %v1238_v46, %v2781_v3  ;;  %v1243_v35 = vadd.f32 %v1239_v10, %v2783_v7 }
 0x58c   :  { %v1955_v2 = vmul.f32 -1.442695, %v1223_v49  ;;  %v1956_v5 = vmul.f32 -1.442695, %v1224_v39 }
 0x58d   :  { %v1957_v11 = vmul.f32 -1.442695, %v1242_v13  ;;  %v1958_v59 = vmul.f32 -1.442695, %v1243_v35 }
 0x58e   :  { %2349 = vpow2.f32 %v1955_v2 }
 0x58f   :  { %2351 = vpow2.f32 %v1956_v5 }
 0x598   :  { %v2350_v32 = vpop.eup %2349 }
 0x599   :  { %v2352_v40 = vpop.eup %2351  ;;  %v1231_v8 = vadd.f32 1.0, %v2350_v32 }
 0x59a   :  { %v1232_v9 = vadd.f32 1.0, %v2352_v40 }
 0x59b   :  { %2353 = vrcp.f32 %v1231_v8 }
 0x59c   :  { %2355 = vrcp.f32 %v1232_v9 }
 0x59d   :  { %2357 = vpow2.f32 %v1957_v11 }
 0x59e   :  { %2359 = vpow2.f32 %v1958_v59 }
 0x5a5   :  { %v2354_v14 = vpop.eup %2353 }
 0x5a6   :  { %v2356_v37 = vpop.eup %2355  ;;  %v1262_v56 = vmul.f32 %v2354_v14, %v1258_v61 }
 0x5a7   :  { %v1263_v57 = vmul.f32 %v2356_v37, %v1259_v15  ;;  %v2358_v60 = vpop.eup %2357 }
 0x5a8   :  { %v1264_v58 = vadd.f32 %v1262_v56, %v2794_v53  ;;  %v2360_v51 = vpop.eup %2359  ;;  %v1250_v49 = vadd.f32 1.0, %v2358_v60 }
 0x5a9   :  { %v1265_v62 = vadd.f32 %v1263_v57, %v2796_v54  ;;  %v1251_v39 = vadd.f32 1.0, %v2360_v51 }
 0x5aa   :  { %2361 = vtanh.f32 %v1264_v58 }
 0x5ab   :  { %2363 = vtanh.f32 %v1265_v62 }
 0x5ac   :  { %2365 = vrcp.f32 %v1250_v49 }
 0x5ad   :  { %2367 = vrcp.f32 %v1251_v39 }
 0x5b4   :  { %v2362_v42 = vpop.eup %2361 }
 0x5b5   :  { %v2364_v55 = vpop.eup %2363  ;;  %v1270_v63 = vrot.slane %v2362_v42, 1 }
 0x5b6   :  { %v1271_v41 = vrot.slane %v2364_v55, 1  ;;  %v2366_v10 = vpop.eup %2365 }
 0x5b7   :  { %v1274_v2 = vsub.f32 %v2993_v38, %v1270_v63  ;;  %v2368_v32 = vpop.eup %2367 }
 0x5b8   :  { %v1275_v5 = vsub.f32 %v2995_v4, %v1271_v41 }
 0x5b9   :  { %v1278_v46 = vrot.slane %v1274_v2, 7 }
 0x5ba   :  { %v1279_v13 = vrot.slane %v1275_v5, 7 }
 0x5bb   :  { %v1282_v35 = vmul.f32 %v2366_v10, %v1278_v46 }
 0x5bc   :  { %v1283_v40 = vmul.f32 %v2368_v32, %v1279_v13 }
 0x5bd   :  { %v3094_v8 = vadd.f32 %v2362_v42, %v1282_v35 }
 0x5be   :  { %v3096_v9 = vadd.f32 %v2364_v55, %v1283_v40 }
 0x5bf   :  { %v1313_v11 = vpack.c.bf16 %v3094_v8, %v3094_v8  ;;  %v1288_v59 = vcombine.high %v3094_v8, %v3094_v8 }
 0x5c0   :  { %v1314_v12 = vpack.c.bf16 %v3096_v9, %v3096_v9  ;;  %v1296_v61 = vcombine.high %v3096_v9, %v3096_v9 }
 0x5c1   :  { %v1317_v14 = vunpack.c.l.b16 %v1313_v11  ;;  %v1295_v58 = vrot.slane %v1288_v59, %v2805_v36 }
 0x5c2   :  { %v1318_v15 = vunpack.c.l.b16 %v1314_v12  ;;  %v1303_v37 = vrot.slane %v1296_v61, %v2805_v36 }
 0x5c3   :  { %v1319_v56 = vrot.slane %v1317_v14, 4 }
 0x5c4   :  { %v1320_v57 = vrot.slane %v1318_v15, 3  ;;  %v1306_v60 = vrot.slane %v1303_v37, 7 }
 0x5c6   :  { %v1321_v62 = vsel %vm520_vm2, %v1320_v57, %v1319_v56  ;;  %v1307_v51 = vsel %vm520_vm2, %v1306_v60, %v1295_v58 }
 0x5c7   :  { %v1322_v49 = vpack.c.b16 %v1321_v62, %v1321_v62  ;;  %v1308_v39 = vsel %vm554_vm3, %v1306_v60, %v1307_v51 }
 0x5c8   :  { %v1309_v42 = vsel %vm556_vm4, %v1306_v60, %v1308_v39 }
 0x5c9   :  { %1357 = vmatmul.mubr.bf16.vlgmr.msra.gmra.mrb[24].mxu0 %v1322_v49  ;;  %2171 = vmatmul.mubr.bf16.vlgmr.msra.gmra.mrb[24].mxu1 %v1322_v49  ;;  %v1310_v55 = vsel %vm558_vm5, %v1306_v60, %v1309_v42  ;;  %v3156_v49 = vld [vmem:[%s3290_s4] ss:$0 sm:$0xff]  ;;  %s2560_s4 = smov 96  }
 0x5ca   :  { %1514 = vmatpush1.bf16.msra.mxu0 %v3002_v16  ;;  %2175 = vmatpush3.bf16.msra.mxu1 %v3005_v17  ;;  %1312 = vst.msk [vmem:[#allocation9 + $0x2] sm:$0x3] %vm561_vm6, %v1310_v55 }
 0x5cb   :  { %1515 = vmatprep.subr.bf16.mxu0 %v3008_v18  ;;  %2176 = vmatprep.subr.bf16.mxu1 %v2556_v1 }
 0x5cc   :  { %1545 = vmatprep.mubr.bf16.mxu0 %v2555_v0  ;;  %2190 = vmatprep.mubr.msk.bf16.mxu1 %vm2557_vm0, %v2556_v1 }
 0x5ce   :  { %1516 = vmatpush1.bf16.msra.mxu0 %v3015_v19  ;;  %2177 = vmatpush3.bf16.msra.mxu1 %v3018_v20 }
 0x5cf   :  { %1517 = vmatprep.subr.bf16.mxu0 %v3021_v21  ;;  %2178 = vmatprep.subr.bf16.mxu1 %v2556_v1 }
 0x5d2   :  { %1518 = vmatpush1.bf16.msra.mxu0 %v3025_v6  ;;  %2179 = vmatpush3.bf16.msra.mxu1 %v3028_v22 }
 0x5d3   :  { %1519 = vmatprep.subr.bf16.mxu0 %v3031_v23  ;;  %2180 = vmatprep.subr.bf16.mxu1 %v2556_v1 }
 0x5d6   :  { %1520 = vmatpush1.bf16.msra.mxu0 %v3035_v24  ;;  %2181 = vmatpush3.bf16.msra.mxu1 %v3038_v25 }
 0x5d7   :  { %1521 = vmatprep.subr.bf16.mxu0 %v3041_v26  ;;  %2182 = vmatprep.subr.bf16.mxu1 %v2556_v1 }
 0x5da   :  { %1522 = vmatpush1.bf16.msra.mxu0 %v3045_v27  ;;  %2183 = vmatpush3.bf16.msra.mxu1 %v3048_v28 }
 0x5db   :  { %1523 = vmatprep.subr.bf16.mxu0 %v3051_v29  ;;  %2184 = vmatprep.subr.bf16.mxu1 %v2556_v1 }
 0x5de   :  { %1524 = vmatpush1.bf16.msra.mxu0 %v3055_v31  ;;  %2185 = vmatpush3.bf16.msra.mxu1 %v3058_v33 }
 0x5df   :  { %1525 = vmatprep.subr.bf16.mxu0 %v3061_v34  ;;  %2186 = vmatprep.subr.bf16.mxu1 %v2556_v1 }
 0x5e2   :  { %1526 = vmatpush1.bf16.msra.mxu0 %v3065_v45  ;;  %2187 = vmatpush3.bf16.msra.mxu1 %v3068_v30 }
 0x5e3   :  { %1527 = vmatprep.subr.bf16.mxu0 %v3071_v47  ;;  %2188 = vmatprep.subr.bf16.mxu1 %v2556_v1 }
 0x5e6   :  { %1528 = vmatpush1.bf16.msra.mxu0 %v3075_v44  ;;  %2189 = vmatpush3.bf16.msra.mxu1 %v3078_v52 }
 0x5e7   :  { %1704 = vmatprep.subr.bf16.mxu0 %v3081_v43  ;;  %2194 = vmatprep.subr.bf16.mxu1 %v2556_v1 }
 0x69c   :  { %v1358_v63 = vpop.f32.mrb[24].mxu0  ;;  %v1399_v41 = vpop.f32.mrb[24].mxu1 }
 0x69d   :  { %v1406_v2 = vrot.slane %v1358_v63, 3  ;;  %v1407_v5 = vrot.slane %v1358_v63, 4  ;;  %v1360_v46 = vpop.f32.mrb[25].mxu0  ;;  %v2172_v10 = vpop.f32.mrb[25].mxu1  ;;  %v1443_v39 = vadd.f32 %v3156_v49, %v1399_v41 }
 0x69e   :  { %v1362_v13 = vpop.f32.mrb[26].mxu0  ;;  %v1402_v32 = vpop.f32.mrb[26].mxu1  ;;  %v1425_v43 = vrot.slane %v1360_v46, 3  ;;  %v1426_v14 = vrot.slane %v1360_v46, 4 }
 0x69f   :  { %v1410_v35 = vadd.f32 %v1406_v2, %v2774_v48  ;;  %v1411_v40 = vadd.f32 %v1407_v5, %v2776_v50  ;;  %v1363_v11 = vpop.f32.mrb[27].mxu0  ;;  %v2173_v59 = vpop.f32.mrb[27].mxu1  ;;  %v1445_v42 = vrot.slane %v1443_v39, 3  ;;  %v1446_v63 = vrot.slane %v1443_v39, 4 }
 0x6a0   :  { %v1429_v15 = vadd.f32 %v1425_v43, %v2781_v3  ;;  %v1430_v56 = vadd.f32 %v1426_v14, %v2783_v7 }
 0x6a1   :  { %v1959_v12 = vmul.f32 -1.442695, %v1410_v35  ;;  %v1960_v61 = vmul.f32 -1.442695, %v1411_v40 }
 0x6a2   :  { %v1961_v62 = vmul.f32 -1.442695, %v1429_v15  ;;  %v1962_v51 = vmul.f32 -1.442695, %v1430_v56  ;;  %v1104_v15 = vrot.slane %v2993_v38, %v2805_v36 }
 0x6a3   :  { %2369 = vpow2.f32 %v1959_v12 }
 0x6a4   :  { %2371 = vpow2.f32 %v1960_v61 }
 0x6ad   :  { %v2370_v37 = vpop.eup %2369 }
 0x6ae   :  { %v2372_v57 = vpop.eup %2371  ;;  %v1418_v58 = vadd.f32 1.0, %v2370_v37 }
 0x6af   :  { %v1419_v60 = vadd.f32 1.0, %v2372_v57 }
 0x6b0   :  { %2373 = vrcp.f32 %v1418_v58 }
 0x6b1   :  { %2375 = vrcp.f32 %v1419_v60 }
 0x6b2   :  { %2377 = vpow2.f32 %v1961_v62 }
 0x6b3   :  { %2379 = vpow2.f32 %v1962_v51  ;;  %v1105_v51 = vcombine.high %v1104_v15, %v1104_v15 }
 0x6ba   :  { %v2374_v55 = vpop.eup %2373 }
 0x6bb   :  { %v2376_v2 = vpop.eup %2375  ;;  %v1449_v5 = vmul.f32 %v2374_v55, %v1445_v42  ;;  %v1112_v55 = vrot.slane %v2995_v4, %v2805_v36 }
 0x6bc   :  { %v1450_v46 = vmul.f32 %v2376_v2, %v1446_v63  ;;  %v2378_v13 = vpop.eup %2377  ;;  %v1114_v2 = vrot.slane %v1105_v51, 1 }
 0x6bd   :  { %v1451_v10 = vadd.f32 %v1449_v5, %v2794_v53  ;;  %v2380_v35 = vpop.eup %2379  ;;  %v1437_v40 = vadd.f32 1.0, %v2378_v13  ;;  %v1113_v13 = vcombine.high %v1112_v55, %v1112_v55 }
 0x6be   :  { %v1452_v32 = vadd.f32 %v1450_v46, %v2796_v54  ;;  %v1438_v11 = vadd.f32 1.0, %v2380_v35 }
 0x6bf   :  { %2381 = vtanh.f32 %v1451_v10 }
 0x6c0   :  { %2383 = vtanh.f32 %v1452_v32 }
 0x6c1   :  { %2385 = vrcp.f32 %v1437_v40 }
 0x6c2   :  { %2387 = vrcp.f32 %v1438_v11  ;;  %v1117_v11 = vsel %vm520_vm2, %v1113_v13, %v1114_v2 }
 0x6c9   :  { %v2382_v41 = vpop.eup %2381 }
 0x6ca   :  { %v2384_v59 = vpop.eup %2383  ;;  %v1457_v12 = vrot.slane %v2382_v41, 1 }
 0x6cb   :  { %v1458_v61 = vrot.slane %v2384_v59, 1  ;;  %v2386_v56 = vpop.eup %2385 }
 0x6cc   :  { %v1461_v43 = vsub.f32 %v3094_v8, %v1457_v12  ;;  %v2388_v58 = vpop.eup %2387 }
 0x6cd   :  { %v1462_v14 = vsub.f32 %v3096_v9, %v1458_v61 }
 0x6ce   :  { %v1465_v37 = vrot.slane %v1461_v43, 7 }
 0x6cf   :  { %v1466_v57 = vrot.slane %v1462_v14, 7  ;;  %v1118_v14 = vsel %vm554_vm3, %v1113_v13, %v1117_v11 }
 0x6d0   :  { %v1469_v60 = vmul.f32 %v2386_v56, %v1465_v37  ;;  %v1119_v37 = vsel %vm556_vm4, %v1113_v13, %v1118_v14 }
 0x6d1   :  { %v1470_v62 = vmul.f32 %v2388_v58, %v1466_v57  ;;  %v1120_v56 = vsel %vm558_vm5, %v1113_v13, %v1119_v37 }
 0x6d2   :  { %v3165_v39 = vadd.f32 %v2382_v41, %v1469_v60 }
 0x6d3   :  { %v3167_v42 = vadd.f32 %v2384_v59, %v1470_v62 }
 0x6d4   :  { %v1502_v8 = vpack.c.bf16 %v3165_v39, %v3165_v39  ;;  %v1475_v38 = vcombine.high %v3165_v39, %v3165_v39 }
 0x6d5   :  { %v1503_v9 = vpack.c.bf16 %v3167_v42, %v3167_v42  ;;  %v1483_v63 = vcombine.high %v3167_v42, %v3167_v42 }
 0x6d6   :  { %v1506_v5 = vunpack.c.l.b16 %v1502_v8  ;;  %v1482_v46 = vrot.slane %v1475_v38, %v2805_v36 }
 0x6d7   :  { %v1507_v10 = vunpack.c.l.b16 %v1503_v9  ;;  %v1490_v4 = vrot.slane %v1483_v63, %v2805_v36 }
 0x6d8   :  { %v1508_v32 = vrot.slane %v1506_v5, 5  ;;  %v1491_v35 = vrot.slane %v1482_v46, 1 }
 0x6d9   :  { %v1509_v40 = vrot.slane %v1507_v10, 4 }
 0x6da   :  { %v1494_v41 = vsel %vm520_vm2, %v1490_v4, %v1491_v35 }
 0x6db   :  { %v1510_v59 = vsel %vm520_vm2, %v1509_v40, %v1508_v32  ;;  %v1495_v12 = vsel %vm554_vm3, %v1490_v4, %v1494_v41 }
 0x6dc   :  { %v1511_v61 = vpack.c.b16 %v1510_v59, %v1510_v59  ;;  %v1496_v43 = vsel %vm556_vm4, %v1490_v4, %v1495_v12 }
 0x6dd   :  { %v1497_v15 = vsel %vm558_vm5, %v1490_v4, %v1496_v43 }
 0x6de   :  { %1546 = vmatmul.mubr.bf16.vlgmr.msra.gmra.mrb[28].mxu0 %v1511_v61  ;;  %2191 = vmatmul.mubr.bf16.vlgmr.msra.gmra.mrb[28].mxu1 %v1511_v61 }
 0x6df   :  { %1498 = vrot.lane.b32.xlu0 %v1497_v15, %s2559_s8  ;;  %1705 = vmatpush1.bf16.msra.mxu0 %v3002_v16 }
 0x6e0   :  { %2195 = vmatpush3.bf16.msra.mxu1 %v3005_v17  ;;  %1706 = vmatprep.subr.bf16.mxu0 %v3008_v18 }
 0x6e1   :  { %2196 = vmatprep.subr.bf16.mxu1 %v2556_v1  ;;  %1736 = vmatprep.mubr.bf16.mxu0 %v2555_v0 }
 0x6e2   :  { %2210 = vmatprep.mubr.msk.bf16.mxu1 %vm2557_vm0, %v2556_v1 }
 0x6e3   :  { %1121 = vrot.lane.b32.xlu0 %v1120_v56, %s2560_s4  ;;  %1707 = vmatpush1.bf16.msra.mxu0 %v3015_v19 }
 0x6e4   :  { %2197 = vmatpush3.bf16.msra.mxu1 %v3018_v20  ;;  %1708 = vmatprep.subr.bf16.mxu0 %v3021_v21 }
 0x6e5   :  { %2198 = vmatprep.subr.bf16.mxu1 %v2556_v1 }
 0x6e7   :  { %1709 = vmatpush1.bf16.msra.mxu0 %v3025_v6 }
 0x6e8   :  { %2199 = vmatpush3.bf16.msra.mxu1 %v3028_v22  ;;  %1710 = vmatprep.subr.bf16.mxu0 %v3031_v23 }
 0x6e9   :  { %2200 = vmatprep.subr.bf16.mxu1 %v2556_v1 }
 0x6eb   :  { %1711 = vmatpush1.bf16.msra.mxu0 %v3035_v24 }
 0x6ec   :  { %2201 = vmatpush3.bf16.msra.mxu1 %v3038_v25  ;;  %1712 = vmatprep.subr.bf16.mxu0 %v3041_v26 }
 0x6ed   :  { %2202 = vmatprep.subr.bf16.mxu1 %v2556_v1 }
 0x6ef   :  { %1713 = vmatpush1.bf16.msra.mxu0 %v3045_v27 }
 0x6f0   :  { %2203 = vmatpush3.bf16.msra.mxu1 %v3048_v28  ;;  %1714 = vmatprep.subr.bf16.mxu0 %v3051_v29 }
 0x6f1   :  { %2204 = vmatprep.subr.bf16.mxu1 %v2556_v1 }
 0x6f3   :  { %1715 = vmatpush1.bf16.msra.mxu0 %v3055_v31 }
 0x6f4   :  { %2205 = vmatpush3.bf16.msra.mxu1 %v3058_v33  ;;  %1716 = vmatprep.subr.bf16.mxu0 %v3061_v34 }
 0x6f5   :  { %2206 = vmatprep.subr.bf16.mxu1 %v2556_v1 }
 0x6f7   :  { %1717 = vmatpush1.bf16.msra.mxu0 %v3065_v45 }
 0x6f8   :  { %2207 = vmatpush3.bf16.msra.mxu1 %v3068_v30  ;;  %1718 = vmatprep.subr.bf16.mxu0 %v3071_v47 }
 0x6f9   :  { %2208 = vmatprep.subr.bf16.mxu1 %v2556_v1 }
 0x6fb   :  { %1719 = vmatpush1.bf16.msra.mxu0 %v3075_v44 }
 0x6fc   :  { %2209 = vmatpush3.bf16.msra.mxu1 %v3078_v52 }
 0x751   :  { %v1499_v0 = vpop.permute.xlu0 %1498 }
 0x752   :  { %1501 = vst.msk [vmem:[#allocation9 + $0x2] sm:$0x3] %vm745_vm7, %v1499_v0 }
 0x755   :  { %v1122_v16 = vpop.permute.xlu0 %1121 }
 0x756   :  { %1125 = vst.msk [vmem:[#allocation9] sm:$0x3] %vm1124_vm9, %v1122_v16 }
 0x7b1   :  { %v1547_v17 = vpop.f32.mrb[28].mxu0  ;;  %v1588_v18 = vpop.f32.mrb[28].mxu1 }
 0x7b2   :  { %v1595_v19 = vrot.slane %v1547_v17, 2  ;;  %v1596_v20 = vrot.slane %v1547_v17, 3  ;;  %v1549_v21 = vpop.f32.mrb[29].mxu0  ;;  %v2192_v6 = vpop.f32.mrb[29].mxu1  ;;  %v1632_v58 = vadd.f32 %v3156_v49, %v1588_v18 }
 0x7b3   :  { %v1551_v22 = vpop.f32.mrb[30].mxu0  ;;  %v1591_v23 = vpop.f32.mrb[30].mxu1  ;;  %v1614_v29 = vrot.slane %v1549_v21, 2  ;;  %v1615_v31 = vrot.slane %v1549_v21, 3 }
 0x7b4   :  { %v1599_v1 = vadd.f32 %v1595_v19, %v2774_v48  ;;  %v1600_v24 = vadd.f32 %v1596_v20, %v2776_v50  ;;  %v1552_v25 = vpop.f32.mrb[31].mxu0  ;;  %v2193_v26 = vpop.f32.mrb[31].mxu1  ;;  %v1634_v60 = vrot.slane %v1632_v58, 2  ;;  %v1635_v51 = vrot.slane %v1632_v58, 3 }
 0x7b5   :  { %v1618_v33 = vadd.f32 %v1614_v29, %v2781_v3  ;;  %v1619_v45 = vadd.f32 %v1615_v31, %v2783_v7 }
 0x7b6   :  { %v1963_v27 = vmul.f32 -1.442695, %v1599_v1  ;;  %v1964_v28 = vmul.f32 -1.442695, %v1600_v24 }
 0x7b7   :  { %v1965_v52 = vmul.f32 -1.442695, %v1618_v33  ;;  %v1966_v57 = vmul.f32 -1.442695, %v1619_v45 }
 0x7b8   :  { %2389 = vpow2.f32 %v1963_v27 }
 0x7b9   :  { %2391 = vpow2.f32 %v1964_v28 }
 0x7c2   :  { %v2390_v34 = vpop.eup %2389 }
 0x7c3   :  { %v2392_v30 = vpop.eup %2391  ;;  %v1607_v47 = vadd.f32 1.0, %v2390_v34 }
 0x7c4   :  { %v1608_v44 = vadd.f32 1.0, %v2392_v30 }
 0x7c5   :  { %2393 = vrcp.f32 %v1607_v47 }
 0x7c6   :  { %2395 = vrcp.f32 %v1608_v44 }
 0x7c7   :  { %2397 = vpow2.f32 %v1965_v52 }
 0x7c8   :  { %2399 = vpow2.f32 %v1966_v57 }
 0x7cf   :  { %v2394_v62 = vpop.eup %2393 }
 0x7d0   :  { %v2396_v55 = vpop.eup %2395  ;;  %v1638_v8 = vmul.f32 %v2394_v62, %v1634_v60 }
 0x7d1   :  { %v1639_v38 = vmul.f32 %v2396_v55, %v1635_v51  ;;  %v2398_v63 = vpop.eup %2397 }
 0x7d2   :  { %v1640_v9 = vadd.f32 %v1638_v8, %v2794_v53  ;;  %v2400_v5 = vpop.eup %2399  ;;  %v1626_v46 = vadd.f32 1.0, %v2398_v63 }
 0x7d3   :  { %v1641_v2 = vadd.f32 %v1639_v38, %v2796_v54  ;;  %v1627_v10 = vadd.f32 1.0, %v2400_v5 }
 0x7d4   :  { %2401 = vtanh.f32 %v1640_v9 }
 0x7d5   :  { %2403 = vtanh.f32 %v1641_v2 }
 0x7d6   :  { %2405 = vrcp.f32 %v1626_v46 }
 0x7d7   :  { %2407 = vrcp.f32 %v1627_v10 }
 0x7de   :  { %v2402_v13 = vpop.eup %2401 }
 0x7df   :  { %v2404_v32 = vpop.eup %2403  ;;  %v1646_v4 = vrot.slane %v2402_v13, 1 }
 0x7e0   :  { %v1647_v35 = vrot.slane %v2404_v32, 1  ;;  %v2406_v59 = vpop.eup %2405 }
 0x7e1   :  { %v1650_v40 = vsub.f32 %v3165_v39, %v1646_v4  ;;  %v2408_v61 = vpop.eup %2407 }
 0x7e2   :  { %v1651_v11 = vsub.f32 %v3167_v42, %v1647_v35 }
 0x7e3   :  { %v1654_v41 = vrot.slane %v1650_v40, 7 }
 0x7e4   :  { %v1655_v12 = vrot.slane %v1651_v11, 7 }
 0x7e5   :  { %v1658_v43 = vmul.f32 %v2406_v59, %v1654_v41 }
 0x7e6   :  { %v1659_v14 = vmul.f32 %v2408_v61, %v1655_v12 }
 0x7e7   :  { %v3236_v15 = vadd.f32 %v2402_v13, %v1658_v43 }
 0x7e8   :  { %v3238_v37 = vadd.f32 %v2404_v32, %v1659_v14 }
 0x7e9   :  { %v1693_v56 = vpack.c.bf16 %v3236_v15, %v3236_v15  ;;  %v1664_v0 = vcombine.high %v3236_v15, %v3236_v15 }
 0x7ea   :  { %v1694_v39 = vpack.c.bf16 %v3238_v37, %v3238_v37  ;;  %v1673_v42 = vcombine.high %v3238_v37, %v3238_v37 }
 0x7eb   :  { %v1697_v16 = vunpack.c.l.b16 %v1693_v56  ;;  %v1671_v18 = vrot.slane %v1664_v0, %v2805_v36 }
 0x7ec   :  { %v1698_v17 = vunpack.c.l.b16 %v1694_v39  ;;  %v1680_v19 = vrot.slane %v1673_v42, %v2805_v36 }
 0x7ed   :  { %v1699_v20 = vrot.slane %v1697_v16, 6  ;;  %v1672_v23 = vcombine.high %v1671_v18, %v1671_v18 }
 0x7ee   :  { %v1700_v21 = vrot.slane %v1698_v17, 5  ;;  %v1681_v6 = vcombine.high %v1680_v19, %v1680_v19 }
 0x7f0   :  { %v1701_v22 = vsel %vm520_vm2, %v1700_v21, %v1699_v20  ;;  %v1684_v1 = vrot.slane %v1681_v6, 7 }
 0x7f1   :  { %v1702_v24 = vpack.c.b16 %v1701_v22, %v1701_v22 }
 0x7f2   :  { %v1685_v25 = vsel %vm520_vm2, %v1684_v1, %v1672_v23 }
 0x7f3   :  { %1737 = vmatmul.mubr.bf16.vlgmr.msra.gmra.mrb[32].mxu0 %v1702_v24  ;;  %2211 = vmatmul.mubr.bf16.vlgmr.msra.gmra.mrb[32].mxu1 %v1702_v24  ;;  %v1686_v26 = vsel %vm554_vm3, %v1684_v1, %v1685_v25 }
 0x7f4   :  { %v1687_v27 = vsel %vm556_vm4, %v1684_v1, %v1686_v26 }
 0x7f5   :  { %v1688_v28 = vsel %vm558_vm5, %v1684_v1, %v1687_v27 }
 0x7f6   :  { %1689 = vrot.lane.b32.xlu1 %v1688_v28, %s2552_s1 }
 0x868   :  { %v1690_v29 = vpop.permute.xlu1 %1689 }
 0x869   :  { %1692 = vst.msk [vmem:[#allocation9 + $0x2] sm:$0x3] %vm934_vm8, %v1690_v29 }
 0x8c6   :  { %v1738_v31 = vpop.f32.mrb[32].mxu0  ;;  %v1779_v33 = vpop.f32.mrb[32].mxu1 }
 0x8c7   :  { %v1786_v34 = vrot.slane %v1738_v31, 1  ;;  %v1787_v45 = vrot.slane %v1738_v31, 2  ;;  %v1740_v30 = vpop.f32.mrb[33].mxu0  ;;  %v2212_v47 = vpop.f32.mrb[33].mxu1  ;;  %v1823_v13 = vadd.f32 %v3156_v49, %v1779_v33 }
 0x8c8   :  { %v1742_v44 = vpop.f32.mrb[34].mxu0  ;;  %v1782_v52 = vpop.f32.mrb[34].mxu1  ;;  %v1805_v8 = vrot.slane %v1740_v30, 1  ;;  %v1806_v38 = vrot.slane %v1740_v30, 2 }
 0x8c9   :  { %v1790_v57 = vadd.f32 %v1786_v34, %v2774_v48  ;;  %v1791_v58 = vadd.f32 %v1787_v45, %v2776_v50  ;;  %v1743_v60 = vpop.f32.mrb[35].mxu0  ;;  %v2213_v62 = vpop.f32.mrb[35].mxu1  ;;  %v1825_v32 = vrot.slane %v1823_v13, 1  ;;  %v1826_v35 = vrot.slane %v1823_v13, 2 }
 0x8ca   :  { %v1809_v9 = vadd.f32 %v1805_v8, %v2781_v3  ;;  %v1810_v2 = vadd.f32 %v1806_v38, %v2783_v7 }
 0x8cb   :  { %v1967_v51 = vmul.f32 -1.442695, %v1790_v57  ;;  %v1968_v55 = vmul.f32 -1.442695, %v1791_v58 }
 0x8cc   :  { %v1969_v48 = vmul.f32 -1.442695, %v1809_v9  ;;  %v1970_v50 = vmul.f32 -1.442695, %v1810_v2 }
 0x8cd   :  { %2409 = vpow2.f32 %v1967_v51 }
 0x8ce   :  { %2411 = vpow2.f32 %v1968_v55 }
 0x8d7   :  { %v2410_v63 = vpop.eup %2409 }
 0x8d8   :  { %v2412_v5 = vpop.eup %2411  ;;  %v1798_v46 = vadd.f32 1.0, %v2410_v63 }
 0x8d9   :  { %v1799_v10 = vadd.f32 1.0, %v2412_v5 }
 0x8da   :  { %2413 = vrcp.f32 %v1798_v46 }
 0x8db   :  { %2415 = vrcp.f32 %v1799_v10 }
 0x8dc   :  { %2417 = vpow2.f32 %v1969_v48 }
 0x8dd   :  { %2419 = vpow2.f32 %v1970_v50 }
 0x8e4   :  { %v2414_v4 = vpop.eup %2413 }
 0x8e5   :  { %v2416_v40 = vpop.eup %2415  ;;  %v1829_v11 = vmul.f32 %v2414_v4, %v1825_v32 }
 0x8e6   :  { %v1830_v3 = vmul.f32 %v2416_v40, %v1826_v35  ;;  %v2418_v7 = vpop.eup %2417 }
 0x8e7   :  { %v1831_v41 = vadd.f32 %v1829_v11, %v2794_v53  ;;  %v2420_v12 = vpop.eup %2419  ;;  %v1817_v61 = vadd.f32 1.0, %v2418_v7 }
 0x8e8   :  { %v1832_v59 = vadd.f32 %v1830_v3, %v2796_v54  ;;  %v1818_v43 = vadd.f32 1.0, %v2420_v12 }
 0x8e9   :  { %2421 = vtanh.f32 %v1831_v41 }
 0x8ea   :  { %2423 = vtanh.f32 %v1832_v59 }
 0x8eb   :  { %2425 = vrcp.f32 %v1817_v61 }
 0x8ec   :  { %2427 = vrcp.f32 %v1818_v43 }
 0x8f3   :  { %v2422_v49 = vpop.eup %2421 }
 0x8f4   :  { %v2424_v14 = vpop.eup %2423  ;;  %v1837_v56 = vrot.slane %v2422_v49, 1 }
 0x8f5   :  { %v1838_v0 = vrot.slane %v2424_v14, 1  ;;  %v2426_v53 = vpop.eup %2425 }
 0x8f6   :  { %v1841_v39 = vsub.f32 %v3236_v15, %v1837_v56  ;;  %v2428_v18 = vpop.eup %2427 }
 0x8f7   :  { %v1842_v42 = vsub.f32 %v3238_v37, %v1838_v0 }
 0x8f8   :  { %v1845_v16 = vrot.slane %v1841_v39, 7 }
 0x8f9   :  { %v1846_v17 = vrot.slane %v1842_v42, 7 }
 0x8fa   :  { %v1849_v54 = vmul.f32 %v2426_v53, %v1845_v16 }
 0x8fb   :  { %v1850_v19 = vmul.f32 %v2428_v18, %v1846_v17 }
 0x8fc   :  { %v1851_v20 = vadd.f32 %v2422_v49, %v1849_v54 }
 0x8fd   :  { %v1852_v21 = vadd.f32 %v2424_v14, %v1850_v19 }
 0x8fe   :  { %v1855_v6 = vcombine.high %v1851_v20, %v1851_v20  ;;  %1887 = vst [vmem:[#allocation2 - $0x7] sm:$0x80] %v1851_v20 }
 0x8ff   :  { %v1864_v22 = vcombine.high %v1852_v21, %v1852_v21  ;;  %v1884_v23 = vrot.slane %v1852_v21, 7 }
 0x900   :  { %v1862_v1 = vrot.slane %v1855_v6, %v2805_v36 }
 0x901   :  { %v1871_v24 = vrot.slane %v1864_v22, %v2805_v36  ;;  %1888 = vst [vmem:[#allocation2 + $0x1] sm:$0x1] %v1884_v23 }
 0x902   :  { %v1863_v15 = vcombine.high %v1862_v1, %v1862_v1 }
 0x903   :  { %v1872_v25 = vcombine.high %v1871_v24, %v1871_v24 }
 0x904   :  { %v1873_v37 = vrot.slane %v1863_v15, 1 }
 0x906   :  { %v1876_v26 = vsel %vm520_vm2, %v1872_v25, %v1873_v37 }
 0x907   :  { %v1877_v27 = vsel %vm554_vm3, %v1872_v25, %v1876_v26 }
 0x908   :  { %v1878_v28 = vsel %vm556_vm4, %v1872_v25, %v1877_v27 }
 0x909   :  { %v1879_v29 = vsel %vm558_vm5, %v1872_v25, %v1878_v28 }
 0x90a   :  { %1880 = vrot.lane.b32.xlu1 %v1879_v29, %s2560_s4 }
 0x97c   :  { %v1881_v31 = vpop.permute.xlu1 %1880 }
 0x97d   :  { %1883 = vst.msk [vmem:[#allocation9 + $0x2] sm:$0x3] %vm1124_vm9, %v1881_v31 }
 0x97e   :  { %2531 = shalt.err (!%p2528_p0)
}
 0x97f   :  { %s2532_s16 = scalar_lea.hbm %s3291_s5, 64 }
 0x980   :  { %p2533_p1 = scmp.ne.s32.totalorder %s3291_s5, %s2532_s16  ;;  %p2536_p2 = scmp.lt.u32.totalorder %s2532_s16, %s3291_s5 }
 0x982   :  { %p2538_p3 = pnand %p2536_p2, %p2533_p1 }
 0x984   :  { %2541 = shalt.err (!%p2538_p3)
}
 0x985   :  { %1898 = dma.vmem_to_hbm [thread:$0]  %s1896_s12, 64, %s3291_s5, [#allocation5]  }
 0x986   :  { %2546 = dma.done.wait [#allocation5], 64  }
 0x987   :  { %2547 = vsyncadd [#allocation5], 4294967232 }
 0x988   :  { %1902 = vsyncpa [#allocation4], 1 }
 0x989   :  { %1903 = vsyncpa [#allocation7], 1 }
 0x98a   :  { %1904 = vsyncpa [#allocation5], 1 }

</bundles_post_ra>
